<compile_context>
chip_gen: v7x
topology: tpu7x:2x2x1
jax: 0.10.0
libtpu: 0.0.40
codegen_flags: <defaults>
</compile_context>

<pallas_src>
import jax
import jax.numpy as jnp
import numpy as np
from jax import lax
from jax.experimental import pallas as pl
from jax.experimental.pallas import tpu as pltpu


def _pick_time_block(T, max_tc=128):
    """Largest time block Tc with (Tc == T) or (Tc % 8 == 0 and Tc divides T)."""
    if T <= max_tc:
        return T
    best = 1
    for tc in range(8, max_tc + 1, 8):
        if T % tc == 0:
            best = tc
    return best if best > 1 else T


def _make_lstm_layer_kernel(B, Tc, D_in, H, apply_sigmoid):
    """One LSTM layer, one time block of Tc steps per grid iteration.

    Refs:
      x_ref   : (B, Tc, D_in)  input block (batch_first)
      wih_ref : (4, D_in, H)   per-gate W_ih^T, bf16
      whh_ref : (4, H, H)      per-gate W_hh^T, bf16
      b_ref   : (4, 1, H)      per-gate (b_ih + b_hh), f32
      out_ref : (B, Tc, H)     output block (h_t, sigmoid-ed on the last layer)
      h_scr, c_scr : VMEM (B, H) f32 recurrent state, carried across grid steps
      gin_scr : VMEM (4, B, Tc, H) f32 hoisted per-gate input projection
      out_acc : VMEM (B, Tc, H) f32 block output accumulator (single bulk store)
    """

    def kernel(x_ref, wih_ref, whh_ref, b_ref, out_ref,
               h_scr, c_scr, gin_scr, out_acc):
        blk = pl.program_id(0)

        @pl.when(blk == 0)
        def _():
            h_scr[...] = jnp.zeros_like(h_scr)
            c_scr[...] = jnp.zeros_like(c_scr)

        # ---- time-parallel input projection, hoisted off the serial recurrence ----
        # One MXU matmul per gate with M = B*Tc rows (instead of an M=B matmul per
        # timestep).  Go through f32 for the leading-dim merge so the reshape is
        # tile-aligned, then feed the MXU in bf16.  Bias is folded in once here.
        x2d = (x_ref[...].astype(jnp.float32)
               .reshape(B * Tc, D_in)
               .astype(jnp.bfloat16))
        for g in range(4):
            gin = jnp.dot(x2d, wih_ref[g], preferred_element_type=jnp.float32)
            gin = gin + b_ref[g]                       # (B*Tc, H) f32
            gin_scr[g] = gin.reshape(B, Tc, H)

        # Hoist the recurrent weights (loaded once per block, reused every step).
        whh = [whh_ref[g] for g in range(4)]           # 4 x (H, H) bf16

        # ---- sequential recurrence over the Tc timesteps of this block ----
        def step(t, carry):
            h, c = carry                               # f32 (B, H)
            hb = h.astype(jnp.bfloat16)
            # gate order [i, f, g, o]; each gate is its own lane-dense (B, H) column
            pre = [gin_scr[g, :, t, :]
                   + jnp.dot(hb, whh[g], preferred_element_type=jnp.float32)
                   for g in range(4)]
            i_g = jax.nn.sigmoid(pre[0])
            f_g = jax.nn.sigmoid(pre[1])
            g_g = jnp.tanh(pre[2])
            o_g = jax.nn.sigmoid(pre[3])
            c_new = f_g * c + i_g * g_g
            h_new = o_g * jnp.tanh(c_new)
            emit = jax.nn.sigmoid(h_new) if apply_sigmoid else h_new
            out_acc[:, t, :] = emit                    # f32 VMEM scratch
            return h_new, c_new

        h_f, c_f = lax.fori_loop(0, Tc, step, (h_scr[...], c_scr[...]), unroll=True)
        h_scr[...] = h_f
        c_scr[...] = c_f

        # Single bulk store of the whole block's output (no per-step partial stores
        # to the output buffer; HBM writeback happens once per block).
        out_ref[...] = out_acc[...].astype(out_ref.dtype)

    return kernel


def lstm_layer_pallas(x, wih, whh, b, *, apply_sigmoid, out_dtype):
    """x: (B, T, D_in) batch_first -> (B, T, H)."""
    B, T, D_in = x.shape
    H = whh.shape[-1]
    Tc = _pick_time_block(T)
    n_blocks = T // Tc
    kernel = _make_lstm_layer_kernel(B, Tc, D_in, H, apply_sigmoid)
    return pl.pallas_call(
        kernel,
        out_shape=jax.ShapeDtypeStruct((B, T, H), out_dtype),
        grid_spec=pltpu.PrefetchScalarGridSpec(
            num_scalar_prefetch=0,
            grid=(n_blocks,),
            in_specs=[
                pl.BlockSpec((B, Tc, D_in), lambda i: (0, i, 0)),
                # Weights/bias: constant index_map -> fetched once, VMEM resident.
                # (For very large H on v7x's 64 MiB VMEM additionally single-buffer
                #  these specs via pipeline_mode=pl.Buffered(1); not needed here.)
                pl.BlockSpec((4, D_in, H), lambda i: (0, 0, 0)),
                pl.BlockSpec((4, H, H), lambda i: (0, 0, 0)),
                pl.BlockSpec((4, 1, H), lambda i: (0, 0, 0)),
            ],
            out_specs=pl.BlockSpec((B, Tc, H), lambda i: (0, i, 0)),
            scratch_shapes=[
                pltpu.VMEM((B, H), jnp.float32),          # h state
                pltpu.VMEM((B, H), jnp.float32),          # c state
                pltpu.VMEM((4, B, Tc, H), jnp.float32),   # hoisted input projection
                pltpu.VMEM((B, Tc, H), jnp.float32),      # block output accumulator
            ],
        ),
        compiler_params=pltpu.CompilerParams(
            dimension_semantics=("arbitrary",),  # recurrence across time blocks
        ),
    )(x, wih, whh, b)


def decoder_rnn_forward(encoded_input, params):
    """encoded_input: (B, T, hidden_size) batch_first, like the PyTorch module.

    Returns sigmoid(LSTM(encoded_input)) of shape (B, T, output_size), f32.
    """
    x = encoded_input                    # stays batch_first: no wrapper transposes
    n_layers = len(params)
    for layer, (wih, whh, b) in enumerate(params):
        last = layer == n_layers - 1
        x = lstm_layer_pallas(
            x, wih, whh, b,
            apply_sigmoid=last,
            # inter-layer activations in bf16 (halves HBM traffic); final output f32
            out_dtype=jnp.float32 if last else jnp.bfloat16,
        )
    return x


# ---------------------------------------------------------------------------
# Deterministic parameter construction (synthetic weights, PyTorch shapes)
# ---------------------------------------------------------------------------
def xavier_uniform(key, shape, gain):
    fan_out, fan_in = shape
    bound = gain * np.sqrt(6.0 / (fan_in + fan_out))
    return jax.random.uniform(key, shape, jnp.float32, -bound, bound)


def init_decoder_params(key, hidden_size, output_size, num_layers):
    """Per layer: (W_ih^T per gate (4, D_in, H) bf16,
                   W_hh^T per gate (4, H,   H) bf16,
                   b_ih + b_hh     (4, 1,   H) f32), gate order [i, f, g, o]."""
    params = []
    gain = np.sqrt(2.0)
    H = output_size
    for layer in range(num_layers):
        d_in = hidden_size if layer == 0 else output_size
        key, k1, k2, k3, k4 = jax.random.split(key, 5)
        w_ih = xavier_uniform(k1, (4 * H, d_in), gain)   # PyTorch layout (4H, D_in)
        w_hh = xavier_uniform(k2, (4 * H, H), gain)      # (4H, H)
        inv = 1.0 / np.sqrt(H)
        b_ih = jax.random.uniform(k3, (4 * H,), jnp.float32, -inv, inv)
        b_hh = jax.random.uniform(k4, (4 * H,), jnp.float32, -inv, inv)

        wih_g = jnp.transpose(w_ih.reshape(4, H, d_in), (0, 2, 1)).astype(jnp.bfloat16)
        whh_g = jnp.transpose(w_hh.reshape(4, H, H), (0, 2, 1)).astype(jnp.bfloat16)
        bias = (b_ih + b_hh).reshape(4, 1, H)            # f32
        params.append((wih_g, whh_g, bias))
    return params


# ---------------------------------------------------------------------------
# Pure-JAX references (for correctness check)
# ---------------------------------------------------------------------------
def decoder_rnn_reference(encoded_input, params):
    """Mirrors the kernel numerics: bf16 matmul inputs, f32 accumulation, f32 gate
    math, bf16 inter-layer activations."""
    x = encoded_input
    n_layers = len(params)
    for layer, (wih_g, whh_g, bias) in enumerate(params):
        last = layer == n_layers - 1
        B, T, _ = x.shape
        H = whh_g.shape[-1]
        xb = x.astype(jnp.bfloat16)
        h = jnp.zeros((B, H), jnp.float32)
        c = jnp.zeros((B, H), jnp.float32)
        outs = []
        for t in range(T):
            hb = h.astype(jnp.bfloat16)
            pre = [
                jnp.dot(xb[:, t, :], wih_g[g], preferred_element_type=jnp.float32)
                + jnp.dot(hb, whh_g[g], preferred_element_type=jnp.float32)
                + bias[g]
                for g in range(4)
            ]
            i_g = jax.nn.sigmoid(pre[0])
            f_g = jax.nn.sigmoid(pre[1])
            g_g = jnp.tanh(pre[2])
            o_g = jax.nn.sigmoid(pre[3])
            c = f_g * c + i_g * g_g
            h = o_g * jnp.tanh(c)
            outs.append(jax.nn.sigmoid(h) if last else h)
        y = jnp.stack(outs, axis=1)
        x = y.astype(jnp.float32) if last else y.astype(jnp.bfloat16)
    return x


def decoder_rnn_reference_f32(encoded_input, params):
    """Full-f32 LSTM on the (bf16-stored) weights: semantic check, loose tolerance."""
    x = encoded_input
    n_layers = len(params)
    for layer, (wih_g, whh_g, bias) in enumerate(params):
        last = layer == n_layers - 1
        B, T, _ = x.shape
        H = whh_g.shape[-1]
        wih = wih_g.astype(jnp.float32)
        whh = whh_g.astype(jnp.float32)
        h = jnp.zeros((B, H), jnp.float32)
        c = jnp.zeros((B, H), jnp.float32)
        outs = []
        for t in range(T):
            pre = [x[:, t, :] @ wih[g] + h @ whh[g] + bias[g] for g in range(4)]
            i_g = jax.nn.sigmoid(pre[0])
            f_g = jax.nn.sigmoid(pre[1])
            g_g = jnp.tanh(pre[2])
            o_g = jax.nn.sigmoid(pre[3])
            c = f_g * c + i_g * g_g
            h = o_g * jnp.tanh(c)
            outs.append(jax.nn.sigmoid(h) if last else h)
        x = jnp.stack(outs, axis=1)
    return x.astype(jnp.float32)


if __name__ == "__main__":
    # Small shapes consistent with the module: (batch, seq, hidden_size)
    batch, seq = 2, 8
    hidden_size, output_size, num_layers = 16, 32, 2

    key = jax.random.PRNGKey(0)
    key, k_in = jax.random.split(key)
    encoded_input = jax.random.normal(k_in, (batch, seq, hidden_size), jnp.float32)

    params = init_decoder_params(key, hidden_size, output_size, num_layers)

    out = decoder_rnn_forward(encoded_input, params)
    out = jax.block_until_ready(out)
    assert out.shape == (batch, seq, output_size)

    # Numerics-matched reference (bf16 matmul inputs, f32 accumulation).
    ref = decoder_rnn_reference(encoded_input, params)
    np.testing.assert_allclose(np.asarray(out), np.asarray(ref), rtol=5e-3, atol=5e-3)

    # Full-f32 reference: only bf16 matmul/activation rounding differs.
    ref32 = decoder_rnn_reference_f32(encoded_input, params)
    np.testing.assert_allclose(np.asarray(out), np.asarray(ref32), rtol=5e-2, atol=5e-2)

    print("KERNEL_OK")
</pallas_src>

<mosaic_0001>
module attributes {stable_mosaic.version = 11 : i64} {
  func.func @kernel(%arg0: i32, %arg1: memref<2x8x16xf32, #tpu.memory_space<vmem>>, %arg2: memref<4x16x32xbf16, #tpu.memory_space<vmem>>, %arg3: memref<4x32x32xbf16, #tpu.memory_space<vmem>>, %arg4: memref<4x1x32xf32, #tpu.memory_space<vmem>>, %arg5: memref<2x8x32xbf16, #tpu.memory_space<vmem>>, %arg6: memref<2x32xf32, #tpu.memory_space<vmem>>, %arg7: memref<2x32xf32, #tpu.memory_space<vmem>>, %arg8: memref<4x2x8x32xf32, #tpu.memory_space<vmem>>, %arg9: memref<2x8x32xf32, #tpu.memory_space<vmem>>) attributes {dimension_semantics = [#tpu.dimension_semantics<arbitrary>], iteration_bounds = array<i64: 1>, scalar_prefetch = 0 : i64, scratch_operands = 4 : i64, tpu.core_type = #tpu.core_type<tc>, window_params = [{transform_indices = @transform_0, window_bounds = array<i64: 2, 8, 16>}, {pipeline_mode = #tpu.pipeline_mode<synchronous>, transform_indices = @transform_1, window_bounds = array<i64: 4, 16, 32>}, {pipeline_mode = #tpu.pipeline_mode<synchronous>, transform_indices = @transform_2, window_bounds = array<i64: 4, 32, 32>}, {pipeline_mode = #tpu.pipeline_mode<synchronous>, transform_indices = @transform_3, window_bounds = array<i64: 4, 1, 32>}, {transform_indices = @transform_4, window_bounds = array<i64: 2, 8, 32>}]} {
    %c0_i32 = arith.constant 0 : i32
    %0 = arith.cmpi eq, %arg0, %c0_i32 : i32
    %1 = arith.extui %0 : i1 to i32
    %c0_i32_0 = arith.constant 0 : i32
    %2 = arith.cmpi ne, %1, %c0_i32_0 : i32
    scf.if %2 {
      %cst_238 = arith.constant 0.000000e+00 : f32
      %433 = vector.broadcast %cst_238 : f32 to vector<2x32xf32>
      %c0_239 = arith.constant 0 : index
      %c0_240 = arith.constant 0 : index
      %434 = vector.load %arg6[%c0_239, %c0_240] : memref<2x32xf32, #tpu.memory_space<vmem>>, vector<2x32xf32>
      tpu.vector_store %arg6[%c0_239, %c0_240], %433 {strides = array<i32>} : memref<2x32xf32, #tpu.memory_space<vmem>>, vector<2x32xf32>,
      %cst_241 = arith.constant 0.000000e+00 : f32
      %435 = vector.broadcast %cst_241 : f32 to vector<2x32xf32>
      %c0_242 = arith.constant 0 : index
      %c0_243 = arith.constant 0 : index
      %436 = vector.load %arg7[%c0_242, %c0_243] : memref<2x32xf32, #tpu.memory_space<vmem>>, vector<2x32xf32>
      tpu.vector_store %arg7[%c0_242, %c0_243], %435 {strides = array<i32>} : memref<2x32xf32, #tpu.memory_space<vmem>>, vector<2x32xf32>,
    } else {
    }
    %c0 = arith.constant 0 : index
    %c0_1 = arith.constant 0 : index
    %c0_2 = arith.constant 0 : index
    %3 = vector.load %arg1[%c0, %c0_1, %c0_2] : memref<2x8x16xf32, #tpu.memory_space<vmem>>, vector<2x8x16xf32>
    %4 = vector.shape_cast %3 : vector<2x8x16xf32> to vector<16x16xf32>
    %5 = arith.truncf %4 : vector<16x16xf32> to vector<16x16xbf16>
    %c0_3 = arith.constant 0 : index
    %c0_4 = arith.constant 0 : index
    %c0_5 = arith.constant 0 : index
    %6 = vector.load %arg2[%c0_3, %c0_4, %c0_5] : memref<4x16x32xbf16, #tpu.memory_space<vmem>>, vector<1x16x32xbf16>
    %7 = vector.shape_cast %6 : vector<1x16x32xbf16> to vector<16x32xbf16>
    %cst = arith.constant dense<0.000000e+00> : vector<16x32xf32>
    %8 = tpu.matmul %5, %7, %cst {dimension_numbers = #tpu.dot_dimension_numbers<[1], [0], [0], [1], [0, 0, 1, 1], [], []>} : vector<16x16xbf16>, vector<16x32xbf16>, vector<16x32xf32> -> vector<16x32xf32>
    %c0_6 = arith.constant 0 : index
    %c0_7 = arith.constant 0 : index
    %c0_8 = arith.constant 0 : index
    %9 = vector.load %arg4[%c0_6, %c0_7, %c0_8] : memref<4x1x32xf32, #tpu.memory_space<vmem>>, vector<1x1x32xf32>
    %10 = vector.shape_cast %9 : vector<1x1x32xf32> to vector<1x32xf32>
    %11 = vector.broadcast %10 : vector<1x32xf32> to vector<16x32xf32>
    %12 = arith.addf %8, %11 : vector<16x32xf32>
    %13 = vector.shape_cast %12 : vector<16x32xf32> to vector<2x8x32xf32>
    %c0_9 = arith.constant 0 : index
    %c0_10 = arith.constant 0 : index
    %c0_11 = arith.constant 0 : index
    %c0_12 = arith.constant 0 : index
    %14 = vector.load %arg8[%c0_9, %c0_10, %c0_11, %c0_12] : memref<4x2x8x32xf32, #tpu.memory_space<vmem>>, vector<1x2x8x32xf32>
    %15 = vector.shape_cast %14 : vector<1x2x8x32xf32> to vector<2x8x32xf32>
    %16 = vector.shape_cast %13 : vector<2x8x32xf32> to vector<1x2x8x32xf32>
    tpu.vector_store %arg8[%c0_9, %c0_10, %c0_11, %c0_12], %16 {strides = array<i32>} : memref<4x2x8x32xf32, #tpu.memory_space<vmem>>, vector<1x2x8x32xf32>,
    %c1 = arith.constant 1 : index
    %c0_13 = arith.constant 0 : index
    %c0_14 = arith.constant 0 : index
    %17 = vector.load %arg2[%c1, %c0_13, %c0_14] : memref<4x16x32xbf16, #tpu.memory_space<vmem>>, vector<1x16x32xbf16>
    %18 = vector.shape_cast %17 : vector<1x16x32xbf16> to vector<16x32xbf16>
    %cst_15 = arith.constant dense<0.000000e+00> : vector<16x32xf32>
    %19 = tpu.matmul %5, %18, %cst_15 {dimension_numbers = #tpu.dot_dimension_numbers<[1], [0], [0], [1], [0, 0, 1, 1], [], []>} : vector<16x16xbf16>, vector<16x32xbf16>, vector<16x32xf32> -> vector<16x32xf32>
    %c1_16 = arith.constant 1 : index
    %c0_17 = arith.constant 0 : index
    %c0_18 = arith.constant 0 : index
    %20 = vector.load %arg4[%c1_16, %c0_17, %c0_18] : memref<4x1x32xf32, #tpu.memory_space<vmem>>, vector<1x1x32xf32>
    %21 = vector.shape_cast %20 : vector<1x1x32xf32> to vector<1x32xf32>
    %22 = vector.broadcast %21 : vector<1x32xf32> to vector<16x32xf32>
    %23 = arith.addf %19, %22 : vector<16x32xf32>
    %24 = vector.shape_cast %23 : vector<16x32xf32> to vector<2x8x32xf32>
    %c1_19 = arith.constant 1 : index
    %c0_20 = arith.constant 0 : index
    %c0_21 = arith.constant 0 : index
    %c0_22 = arith.constant 0 : index
    %25 = vector.load %arg8[%c1_19, %c0_20, %c0_21, %c0_22] : memref<4x2x8x32xf32, #tpu.memory_space<vmem>>, vector<1x2x8x32xf32>
    %26 = vector.shape_cast %25 : vector<1x2x8x32xf32> to vector<2x8x32xf32>
    %27 = vector.shape_cast %24 : vector<2x8x32xf32> to vector<1x2x8x32xf32>
    tpu.vector_store %arg8[%c1_19, %c0_20, %c0_21, %c0_22], %27 {strides = array<i32>} : memref<4x2x8x32xf32, #tpu.memory_space<vmem>>, vector<1x2x8x32xf32>,
    %c2 = arith.constant 2 : index
    %c0_23 = arith.constant 0 : index
    %c0_24 = arith.constant 0 : index
    %28 = vector.load %arg2[%c2, %c0_23, %c0_24] : memref<4x16x32xbf16, #tpu.memory_space<vmem>>, vector<1x16x32xbf16>
    %29 = vector.shape_cast %28 : vector<1x16x32xbf16> to vector<16x32xbf16>
    %cst_25 = arith.constant dense<0.000000e+00> : vector<16x32xf32>
    %30 = tpu.matmul %5, %29, %cst_25 {dimension_numbers = #tpu.dot_dimension_numbers<[1], [0], [0], [1], [0, 0, 1, 1], [], []>} : vector<16x16xbf16>, vector<16x32xbf16>, vector<16x32xf32> -> vector<16x32xf32>
    %c2_26 = arith.constant 2 : index
    %c0_27 = arith.constant 0 : index
    %c0_28 = arith.constant 0 : index
    %31 = vector.load %arg4[%c2_26, %c0_27, %c0_28] : memref<4x1x32xf32, #tpu.memory_space<vmem>>, vector<1x1x32xf32>
    %32 = vector.shape_cast %31 : vector<1x1x32xf32> to vector<1x32xf32>
    %33 = vector.broadcast %32 : vector<1x32xf32> to vector<16x32xf32>
    %34 = arith.addf %30, %33 : vector<16x32xf32>
    %35 = vector.shape_cast %34 : vector<16x32xf32> to vector<2x8x32xf32>
    %c2_29 = arith.constant 2 : index
    %c0_30 = arith.constant 0 : index
    %c0_31 = arith.constant 0 : index
    %c0_32 = arith.constant 0 : index
    %36 = vector.load %arg8[%c2_29, %c0_30, %c0_31, %c0_32] : memref<4x2x8x32xf32, #tpu.memory_space<vmem>>, vector<1x2x8x32xf32>
    %37 = vector.shape_cast %36 : vector<1x2x8x32xf32> to vector<2x8x32xf32>
    %38 = vector.shape_cast %35 : vector<2x8x32xf32> to vector<1x2x8x32xf32>
    tpu.vector_store %arg8[%c2_29, %c0_30, %c0_31, %c0_32], %38 {strides = array<i32>} : memref<4x2x8x32xf32, #tpu.memory_space<vmem>>, vector<1x2x8x32xf32>,
    %c3 = arith.constant 3 : index
    %c0_33 = arith.constant 0 : index
    %c0_34 = arith.constant 0 : index
    %39 = vector.load %arg2[%c3, %c0_33, %c0_34] : memref<4x16x32xbf16, #tpu.memory_space<vmem>>, vector<1x16x32xbf16>
    %40 = vector.shape_cast %39 : vector<1x16x32xbf16> to vector<16x32xbf16>
    %cst_35 = arith.constant dense<0.000000e+00> : vector<16x32xf32>
    %41 = tpu.matmul %5, %40, %cst_35 {dimension_numbers = #tpu.dot_dimension_numbers<[1], [0], [0], [1], [0, 0, 1, 1], [], []>} : vector<16x16xbf16>, vector<16x32xbf16>, vector<16x32xf32> -> vector<16x32xf32>
    %c3_36 = arith.constant 3 : index
    %c0_37 = arith.constant 0 : index
    %c0_38 = arith.constant 0 : index
    %42 = vector.load %arg4[%c3_36, %c0_37, %c0_38] : memref<4x1x32xf32, #tpu.memory_space<vmem>>, vector<1x1x32xf32>
    %43 = vector.shape_cast %42 : vector<1x1x32xf32> to vector<1x32xf32>
    %44 = vector.broadcast %43 : vector<1x32xf32> to vector<16x32xf32>
    %45 = arith.addf %41, %44 : vector<16x32xf32>
    %46 = vector.shape_cast %45 : vector<16x32xf32> to vector<2x8x32xf32>
    %c3_39 = arith.constant 3 : index
    %c0_40 = arith.constant 0 : index
    %c0_41 = arith.constant 0 : index
    %c0_42 = arith.constant 0 : index
    %47 = vector.load %arg8[%c3_39, %c0_40, %c0_41, %c0_42] : memref<4x2x8x32xf32, #tpu.memory_space<vmem>>, vector<1x2x8x32xf32>
    %48 = vector.shape_cast %47 : vector<1x2x8x32xf32> to vector<2x8x32xf32>
    %49 = vector.shape_cast %46 : vector<2x8x32xf32> to vector<1x2x8x32xf32>
    tpu.vector_store %arg8[%c3_39, %c0_40, %c0_41, %c0_42], %49 {strides = array<i32>} : memref<4x2x8x32xf32, #tpu.memory_space<vmem>>, vector<1x2x8x32xf32>,
    %c0_43 = arith.constant 0 : index
    %c0_44 = arith.constant 0 : index
    %c0_45 = arith.constant 0 : index
    %50 = vector.load %arg3[%c0_43, %c0_44, %c0_45] : memref<4x32x32xbf16, #tpu.memory_space<vmem>>, vector<1x32x32xbf16>
    %51 = vector.shape_cast %50 : vector<1x32x32xbf16> to vector<32x32xbf16>
    %c1_46 = arith.constant 1 : index
    %c0_47 = arith.constant 0 : index
    %c0_48 = arith.constant 0 : index
    %52 = vector.load %arg3[%c1_46, %c0_47, %c0_48] : memref<4x32x32xbf16, #tpu.memory_space<vmem>>, vector<1x32x32xbf16>
    %53 = vector.shape_cast %52 : vector<1x32x32xbf16> to vector<32x32xbf16>
    %c2_49 = arith.constant 2 : index
    %c0_50 = arith.constant 0 : index
    %c0_51 = arith.constant 0 : index
    %54 = vector.load %arg3[%c2_49, %c0_50, %c0_51] : memref<4x32x32xbf16, #tpu.memory_space<vmem>>, vector<1x32x32xbf16>
    %55 = vector.shape_cast %54 : vector<1x32x32xbf16> to vector<32x32xbf16>
    %c3_52 = arith.constant 3 : index
    %c0_53 = arith.constant 0 : index
    %c0_54 = arith.constant 0 : index
    %56 = vector.load %arg3[%c3_52, %c0_53, %c0_54] : memref<4x32x32xbf16, #tpu.memory_space<vmem>>, vector<1x32x32xbf16>
    %57 = vector.shape_cast %56 : vector<1x32x32xbf16> to vector<32x32xbf16>
    %c0_55 = arith.constant 0 : index
    %c0_56 = arith.constant 0 : index
    %58 = vector.load %arg6[%c0_55, %c0_56] : memref<2x32xf32, #tpu.memory_space<vmem>>, vector<2x32xf32>
    %c0_57 = arith.constant 0 : index
    %c0_58 = arith.constant 0 : index
    %59 = vector.load %arg7[%c0_57, %c0_58] : memref<2x32xf32, #tpu.memory_space<vmem>>, vector<2x32xf32>
    %c0_i32_59 = arith.constant 0 : i32
    %60 = arith.truncf %58 : vector<2x32xf32> to vector<2x32xbf16>
    %c0_60 = arith.constant 0 : index
    %c0_61 = arith.constant 0 : index
    %61 = arith.index_cast %c0_i32_59 : i32 to index
    %c0_62 = arith.constant 0 : index
    %62 = vector.load %arg8[%c0_60, %c0_61, %61, %c0_62] : memref<4x2x8x32xf32, #tpu.memory_space<vmem>>, vector<1x2x1x32xf32>
    %63 = vector.shape_cast %62 : vector<1x2x1x32xf32> to vector<2x32xf32>
    %cst_63 = arith.constant dense<0.000000e+00> : vector<2x32xf32>
    %64 = tpu.matmul %60, %51, %cst_63 {dimension_numbers = #tpu.dot_dimension_numbers<[1], [0], [0], [1], [0, 0, 1, 1], [], []>} : vector<2x32xbf16>, vector<32x32xbf16>, vector<2x32xf32> -> vector<2x32xf32>
    %65 = arith.addf %63, %64 : vector<2x32xf32>
    %c1_64 = arith.constant 1 : index
    %c0_65 = arith.constant 0 : index
    %66 = arith.index_cast %c0_i32_59 : i32 to index
    %c0_66 = arith.constant 0 : index
    %67 = vector.load %arg8[%c1_64, %c0_65, %66, %c0_66] : memref<4x2x8x32xf32, #tpu.memory_space<vmem>>, vector<1x2x1x32xf32>
    %68 = vector.shape_cast %67 : vector<1x2x1x32xf32> to vector<2x32xf32>
    %cst_67 = arith.constant dense<0.000000e+00> : vector<2x32xf32>
    %69 = tpu.matmul %60, %53, %cst_67 {dimension_numbers = #tpu.dot_dimension_numbers<[1], [0], [0], [1], [0, 0, 1, 1], [], []>} : vector<2x32xbf16>, vector<32x32xbf16>, vector<2x32xf32> -> vector<2x32xf32>
    %70 = arith.addf %68, %69 : vector<2x32xf32>
    %c2_68 = arith.constant 2 : index
    %c0_69 = arith.constant 0 : index
    %71 = arith.index_cast %c0_i32_59 : i32 to index
    %c0_70 = arith.constant 0 : index
    %72 = vector.load %arg8[%c2_68, %c0_69, %71, %c0_70] : memref<4x2x8x32xf32, #tpu.memory_space<vmem>>, vector<1x2x1x32xf32>
    %73 = vector.shape_cast %72 : vector<1x2x1x32xf32> to vector<2x32xf32>
    %cst_71 = arith.constant dense<0.000000e+00> : vector<2x32xf32>
    %74 = tpu.matmul %60, %55, %cst_71 {dimension_numbers = #tpu.dot_dimension_numbers<[1], [0], [0], [1], [0, 0, 1, 1], [], []>} : vector<2x32xbf16>, vector<32x32xbf16>, vector<2x32xf32> -> vector<2x32xf32>
    %75 = arith.addf %73, %74 : vector<2x32xf32>
    %c3_72 = arith.constant 3 : index
    %c0_73 = arith.constant 0 : index
    %76 = arith.index_cast %c0_i32_59 : i32 to index
    %c0_74 = arith.constant 0 : index
    %77 = vector.load %arg8[%c3_72, %c0_73, %76, %c0_74] : memref<4x2x8x32xf32, #tpu.memory_space<vmem>>, vector<1x2x1x32xf32>
    %78 = vector.shape_cast %77 : vector<1x2x1x32xf32> to vector<2x32xf32>
    %cst_75 = arith.constant dense<0.000000e+00> : vector<2x32xf32>
    %79 = tpu.matmul %60, %57, %cst_75 {dimension_numbers = #tpu.dot_dimension_numbers<[1], [0], [0], [1], [0, 0, 1, 1], [], []>} : vector<2x32xbf16>, vector<32x32xbf16>, vector<2x32xf32> -> vector<2x32xf32>
    %80 = arith.addf %78, %79 : vector<2x32xf32>
    %81 = arith.negf %65 : vector<2x32xf32>
    %82 = math.exp %81 : vector<2x32xf32>
    %cst_76 = arith.constant 1.000000e+00 : f32
    %83 = vector.broadcast %cst_76 : f32 to vector<2x32xf32>
    %84 = arith.addf %83, %82 : vector<2x32xf32>
    %85 = arith.divf %83, %84 : vector<2x32xf32>
    %86 = arith.negf %70 : vector<2x32xf32>
    %87 = math.exp %86 : vector<2x32xf32>
    %cst_77 = arith.constant 1.000000e+00 : f32
    %88 = vector.broadcast %cst_77 : f32 to vector<2x32xf32>
    %89 = arith.addf %88, %87 : vector<2x32xf32>
    %90 = arith.divf %88, %89 : vector<2x32xf32>
    %91 = math.tanh %75 : vector<2x32xf32>
    %92 = arith.negf %80 : vector<2x32xf32>
    %93 = math.exp %92 : vector<2x32xf32>
    %cst_78 = arith.constant 1.000000e+00 : f32
    %94 = vector.broadcast %cst_78 : f32 to vector<2x32xf32>
    %95 = arith.addf %94, %93 : vector<2x32xf32>
    %96 = arith.divf %94, %95 : vector<2x32xf32>
    %97 = arith.mulf %90, %59 : vector<2x32xf32>
    %98 = arith.mulf %85, %91 : vector<2x32xf32>
    %99 = arith.addf %97, %98 : vector<2x32xf32>
    %100 = math.tanh %99 : vector<2x32xf32>
    %101 = arith.mulf %96, %100 : vector<2x32xf32>
    %c0_79 = arith.constant 0 : index
    %102 = arith.index_cast %c0_i32_59 : i32 to index
    %c0_80 = arith.constant 0 : index
    %103 = vector.load %arg9[%c0_79, %102, %c0_80] : memref<2x8x32xf32, #tpu.memory_space<vmem>>, vector<2x1x32xf32>
    %104 = vector.shape_cast %103 : vector<2x1x32xf32> to vector<2x32xf32>
    %105 = vector.shape_cast %101 : vector<2x32xf32> to vector<2x1x32xf32>
    tpu.vector_store %arg9[%c0_79, %102, %c0_80], %105 {strides = array<i32>} : memref<2x8x32xf32, #tpu.memory_space<vmem>>, vector<2x1x32xf32>,
    %c1_i32 = arith.constant 1 : i32
    %106 = arith.truncf %101 : vector<2x32xf32> to vector<2x32xbf16>
    %c0_81 = arith.constant 0 : index
    %c0_82 = arith.constant 0 : index
    %107 = arith.index_cast %c1_i32 : i32 to index
    %c0_83 = arith.constant 0 : index
    %108 = vector.load %arg8[%c0_81, %c0_82, %107, %c0_83] : memref<4x2x8x32xf32, #tpu.memory_space<vmem>>, vector<1x2x1x32xf32>
    %109 = vector.shape_cast %108 : vector<1x2x1x32xf32> to vector<2x32xf32>
    %cst_84 = arith.constant dense<0.000000e+00> : vector<2x32xf32>
    %110 = tpu.matmul %106, %51, %cst_84 {dimension_numbers = #tpu.dot_dimension_numbers<[1], [0], [0], [1], [0, 0, 1, 1], [], []>} : vector<2x32xbf16>, vector<32x32xbf16>, vector<2x32xf32> -> vector<2x32xf32>
    %111 = arith.addf %109, %110 : vector<2x32xf32>
    %c1_85 = arith.constant 1 : index
    %c0_86 = arith.constant 0 : index
    %112 = arith.index_cast %c1_i32 : i32 to index
    %c0_87 = arith.constant 0 : index
    %113 = vector.load %arg8[%c1_85, %c0_86, %112, %c0_87] : memref<4x2x8x32xf32, #tpu.memory_space<vmem>>, vector<1x2x1x32xf32>
    %114 = vector.shape_cast %113 : vector<1x2x1x32xf32> to vector<2x32xf32>
    %cst_88 = arith.constant dense<0.000000e+00> : vector<2x32xf32>
    %115 = tpu.matmul %106, %53, %cst_88 {dimension_numbers = #tpu.dot_dimension_numbers<[1], [0], [0], [1], [0, 0, 1, 1], [], []>} : vector<2x32xbf16>, vector<32x32xbf16>, vector<2x32xf32> -> vector<2x32xf32>
    %116 = arith.addf %114, %115 : vector<2x32xf32>
    %c2_89 = arith.constant 2 : index
    %c0_90 = arith.constant 0 : index
    %117 = arith.index_cast %c1_i32 : i32 to index
    %c0_91 = arith.constant 0 : index
    %118 = vector.load %arg8[%c2_89, %c0_90, %117, %c0_91] : memref<4x2x8x32xf32, #tpu.memory_space<vmem>>, vector<1x2x1x32xf32>
    %119 = vector.shape_cast %118 : vector<1x2x1x32xf32> to vector<2x32xf32>
    %cst_92 = arith.constant dense<0.000000e+00> : vector<2x32xf32>
    %120 = tpu.matmul %106, %55, %cst_92 {dimension_numbers = #tpu.dot_dimension_numbers<[1], [0], [0], [1], [0, 0, 1, 1], [], []>} : vector<2x32xbf16>, vector<32x32xbf16>, vector<2x32xf32> -> vector<2x32xf32>
    %121 = arith.addf %119, %120 : vector<2x32xf32>
    %c3_93 = arith.constant 3 : index
    %c0_94 = arith.constant 0 : index
    %122 = arith.index_cast %c1_i32 : i32 to index
    %c0_95 = arith.constant 0 : index
    %123 = vector.load %arg8[%c3_93, %c0_94, %122, %c0_95] : memref<4x2x8x32xf32, #tpu.memory_space<vmem>>, vector<1x2x1x32xf32>
    %124 = vector.shape_cast %123 : vector<1x2x1x32xf32> to vector<2x32xf32>
    %cst_96 = arith.constant dense<0.000000e+00> : vector<2x32xf32>
    %125 = tpu.matmul %106, %57, %cst_96 {dimension_numbers = #tpu.dot_dimension_numbers<[1], [0], [0], [1], [0, 0, 1, 1], [], []>} : vector<2x32xbf16>, vector<32x32xbf16>, vector<2x32xf32> -> vector<2x32xf32>
    %126 = arith.addf %124, %125 : vector<2x32xf32>
    %127 = arith.negf %111 : vector<2x32xf32>
    %128 = math.exp %127 : vector<2x32xf32>
    %cst_97 = arith.constant 1.000000e+00 : f32
    %129 = vector.broadcast %cst_97 : f32 to vector<2x32xf32>
    %130 = arith.addf %129, %128 : vector<2x32xf32>
    %131 = arith.divf %129, %130 : vector<2x32xf32>
    %132 = arith.negf %116 : vector<2x32xf32>
    %133 = math.exp %132 : vector<2x32xf32>
    %cst_98 = arith.constant 1.000000e+00 : f32
    %134 = vector.broadcast %cst_98 : f32 to vector<2x32xf32>
    %135 = arith.addf %134, %133 : vector<2x32xf32>
    %136 = arith.divf %134, %135 : vector<2x32xf32>
    %137 = math.tanh %121 : vector<2x32xf32>
    %138 = arith.negf %126 : vector<2x32xf32>
    %139 = math.exp %138 : vector<2x32xf32>
    %cst_99 = arith.constant 1.000000e+00 : f32
    %140 = vector.broadcast %cst_99 : f32 to vector<2x32xf32>
    %141 = arith.addf %140, %139 : vector<2x32xf32>
    %142 = arith.divf %140, %141 : vector<2x32xf32>
    %143 = arith.mulf %136, %99 : vector<2x32xf32>
    %144 = arith.mulf %131, %137 : vector<2x32xf32>
    %145 = arith.addf %143, %144 : vector<2x32xf32>
    %146 = math.tanh %145 : vector<2x32xf32>
    %147 = arith.mulf %142, %146 : vector<2x32xf32>
    %c0_100 = arith.constant 0 : index
    %148 = arith.index_cast %c1_i32 : i32 to index
    %c0_101 = arith.constant 0 : index
    %149 = vector.load %arg9[%c0_100, %148, %c0_101] : memref<2x8x32xf32, #tpu.memory_space<vmem>>, vector<2x1x32xf32>
    %150 = vector.shape_cast %149 : vector<2x1x32xf32> to vector<2x32xf32>
    %151 = vector.shape_cast %147 : vector<2x32xf32> to vector<2x1x32xf32>
    tpu.vector_store %arg9[%c0_100, %148, %c0_101], %151 {strides = array<i32>} : memref<2x8x32xf32, #tpu.memory_space<vmem>>, vector<2x1x32xf32>,
    %c2_i32 = arith.constant 2 : i32
    %152 = arith.truncf %147 : vector<2x32xf32> to vector<2x32xbf16>
    %c0_102 = arith.constant 0 : index
    %c0_103 = arith.constant 0 : index
    %153 = arith.index_cast %c2_i32 : i32 to index
    %c0_104 = arith.constant 0 : index
    %154 = vector.load %arg8[%c0_102, %c0_103, %153, %c0_104] : memref<4x2x8x32xf32, #tpu.memory_space<vmem>>, vector<1x2x1x32xf32>
    %155 = vector.shape_cast %154 : vector<1x2x1x32xf32> to vector<2x32xf32>
    %cst_105 = arith.constant dense<0.000000e+00> : vector<2x32xf32>
    %156 = tpu.matmul %152, %51, %cst_105 {dimension_numbers = #tpu.dot_dimension_numbers<[1], [0], [0], [1], [0, 0, 1, 1], [], []>} : vector<2x32xbf16>, vector<32x32xbf16>, vector<2x32xf32> -> vector<2x32xf32>
    %157 = arith.addf %155, %156 : vector<2x32xf32>
    %c1_106 = arith.constant 1 : index
    %c0_107 = arith.constant 0 : index
    %158 = arith.index_cast %c2_i32 : i32 to index
    %c0_108 = arith.constant 0 : index
    %159 = vector.load %arg8[%c1_106, %c0_107, %158, %c0_108] : memref<4x2x8x32xf32, #tpu.memory_space<vmem>>, vector<1x2x1x32xf32>
    %160 = vector.shape_cast %159 : vector<1x2x1x32xf32> to vector<2x32xf32>
    %cst_109 = arith.constant dense<0.000000e+00> : vector<2x32xf32>
    %161 = tpu.matmul %152, %53, %cst_109 {dimension_numbers = #tpu.dot_dimension_numbers<[1], [0], [0], [1], [0, 0, 1, 1], [], []>} : vector<2x32xbf16>, vector<32x32xbf16>, vector<2x32xf32> -> vector<2x32xf32>
    %162 = arith.addf %160, %161 : vector<2x32xf32>
    %c2_110 = arith.constant 2 : index
    %c0_111 = arith.constant 0 : index
    %163 = arith.index_cast %c2_i32 : i32 to index
    %c0_112 = arith.constant 0 : index
    %164 = vector.load %arg8[%c2_110, %c0_111, %163, %c0_112] : memref<4x2x8x32xf32, #tpu.memory_space<vmem>>, vector<1x2x1x32xf32>
    %165 = vector.shape_cast %164 : vector<1x2x1x32xf32> to vector<2x32xf32>
    %cst_113 = arith.constant dense<0.000000e+00> : vector<2x32xf32>
    %166 = tpu.matmul %152, %55, %cst_113 {dimension_numbers = #tpu.dot_dimension_numbers<[1], [0], [0], [1], [0, 0, 1, 1], [], []>} : vector<2x32xbf16>, vector<32x32xbf16>, vector<2x32xf32> -> vector<2x32xf32>
    %167 = arith.addf %165, %166 : vector<2x32xf32>
    %c3_114 = arith.constant 3 : index
    %c0_115 = arith.constant 0 : index
    %168 = arith.index_cast %c2_i32 : i32 to index
    %c0_116 = arith.constant 0 : index
    %169 = vector.load %arg8[%c3_114, %c0_115, %168, %c0_116] : memref<4x2x8x32xf32, #tpu.memory_space<vmem>>, vector<1x2x1x32xf32>
    %170 = vector.shape_cast %169 : vector<1x2x1x32xf32> to vector<2x32xf32>
    %cst_117 = arith.constant dense<0.000000e+00> : vector<2x32xf32>
    %171 = tpu.matmul %152, %57, %cst_117 {dimension_numbers = #tpu.dot_dimension_numbers<[1], [0], [0], [1], [0, 0, 1, 1], [], []>} : vector<2x32xbf16>, vector<32x32xbf16>, vector<2x32xf32> -> vector<2x32xf32>
    %172 = arith.addf %170, %171 : vector<2x32xf32>
    %173 = arith.negf %157 : vector<2x32xf32>
    %174 = math.exp %173 : vector<2x32xf32>
    %cst_118 = arith.constant 1.000000e+00 : f32
    %175 = vector.broadcast %cst_118 : f32 to vector<2x32xf32>
    %176 = arith.addf %175, %174 : vector<2x32xf32>
    %177 = arith.divf %175, %176 : vector<2x32xf32>
    %178 = arith.negf %162 : vector<2x32xf32>
    %179 = math.exp %178 : vector<2x32xf32>
    %cst_119 = arith.constant 1.000000e+00 : f32
    %180 = vector.broadcast %cst_119 : f32 to vector<2x32xf32>
    %181 = arith.addf %180, %179 : vector<2x32xf32>
    %182 = arith.divf %180, %181 : vector<2x32xf32>
    %183 = math.tanh %167 : vector<2x32xf32>
    %184 = arith.negf %172 : vector<2x32xf32>
    %185 = math.exp %184 : vector<2x32xf32>
    %cst_120 = arith.constant 1.000000e+00 : f32
    %186 = vector.broadcast %cst_120 : f32 to vector<2x32xf32>
    %187 = arith.addf %186, %185 : vector<2x32xf32>
    %188 = arith.divf %186, %187 : vector<2x32xf32>
    %189 = arith.mulf %182, %145 : vector<2x32xf32>
    %190 = arith.mulf %177, %183 : vector<2x32xf32>
    %191 = arith.addf %189, %190 : vector<2x32xf32>
    %192 = math.tanh %191 : vector<2x32xf32>
    %193 = arith.mulf %188, %192 : vector<2x32xf32>
    %c0_121 = arith.constant 0 : index
    %194 = arith.index_cast %c2_i32 : i32 to index
    %c0_122 = arith.constant 0 : index
    %195 = vector.load %arg9[%c0_121, %194, %c0_122] : memref<2x8x32xf32, #tpu.memory_space<vmem>>, vector<2x1x32xf32>
    %196 = vector.shape_cast %195 : vector<2x1x32xf32> to vector<2x32xf32>
    %197 = vector.shape_cast %193 : vector<2x32xf32> to vector<2x1x32xf32>
    tpu.vector_store %arg9[%c0_121, %194, %c0_122], %197 {strides = array<i32>} : memref<2x8x32xf32, #tpu.memory_space<vmem>>, vector<2x1x32xf32>,
    %c3_i32 = arith.constant 3 : i32
    %198 = arith.truncf %193 : vector<2x32xf32> to vector<2x32xbf16>
    %c0_123 = arith.constant 0 : index
    %c0_124 = arith.constant 0 : index
    %199 = arith.index_cast %c3_i32 : i32 to index
    %c0_125 = arith.constant 0 : index
    %200 = vector.load %arg8[%c0_123, %c0_124, %199, %c0_125] : memref<4x2x8x32xf32, #tpu.memory_space<vmem>>, vector<1x2x1x32xf32>
    %201 = vector.shape_cast %200 : vector<1x2x1x32xf32> to vector<2x32xf32>
    %cst_126 = arith.constant dense<0.000000e+00> : vector<2x32xf32>
    %202 = tpu.matmul %198, %51, %cst_126 {dimension_numbers = #tpu.dot_dimension_numbers<[1], [0], [0], [1], [0, 0, 1, 1], [], []>} : vector<2x32xbf16>, vector<32x32xbf16>, vector<2x32xf32> -> vector<2x32xf32>
    %203 = arith.addf %201, %202 : vector<2x32xf32>
    %c1_127 = arith.constant 1 : index
    %c0_128 = arith.constant 0 : index
    %204 = arith.index_cast %c3_i32 : i32 to index
    %c0_129 = arith.constant 0 : index
    %205 = vector.load %arg8[%c1_127, %c0_128, %204, %c0_129] : memref<4x2x8x32xf32, #tpu.memory_space<vmem>>, vector<1x2x1x32xf32>
    %206 = vector.shape_cast %205 : vector<1x2x1x32xf32> to vector<2x32xf32>
    %cst_130 = arith.constant dense<0.000000e+00> : vector<2x32xf32>
    %207 = tpu.matmul %198, %53, %cst_130 {dimension_numbers = #tpu.dot_dimension_numbers<[1], [0], [0], [1], [0, 0, 1, 1], [], []>} : vector<2x32xbf16>, vector<32x32xbf16>, vector<2x32xf32> -> vector<2x32xf32>
    %208 = arith.addf %206, %207 : vector<2x32xf32>
    %c2_131 = arith.constant 2 : index
    %c0_132 = arith.constant 0 : index
    %209 = arith.index_cast %c3_i32 : i32 to index
    %c0_133 = arith.constant 0 : index
    %210 = vector.load %arg8[%c2_131, %c0_132, %209, %c0_133] : memref<4x2x8x32xf32, #tpu.memory_space<vmem>>, vector<1x2x1x32xf32>
    %211 = vector.shape_cast %210 : vector<1x2x1x32xf32> to vector<2x32xf32>
    %cst_134 = arith.constant dense<0.000000e+00> : vector<2x32xf32>
    %212 = tpu.matmul %198, %55, %cst_134 {dimension_numbers = #tpu.dot_dimension_numbers<[1], [0], [0], [1], [0, 0, 1, 1], [], []>} : vector<2x32xbf16>, vector<32x32xbf16>, vector<2x32xf32> -> vector<2x32xf32>
    %213 = arith.addf %211, %212 : vector<2x32xf32>
    %c3_135 = arith.constant 3 : index
    %c0_136 = arith.constant 0 : index
    %214 = arith.index_cast %c3_i32 : i32 to index
    %c0_137 = arith.constant 0 : index
    %215 = vector.load %arg8[%c3_135, %c0_136, %214, %c0_137] : memref<4x2x8x32xf32, #tpu.memory_space<vmem>>, vector<1x2x1x32xf32>
    %216 = vector.shape_cast %215 : vector<1x2x1x32xf32> to vector<2x32xf32>
    %cst_138 = arith.constant dense<0.000000e+00> : vector<2x32xf32>
    %217 = tpu.matmul %198, %57, %cst_138 {dimension_numbers = #tpu.dot_dimension_numbers<[1], [0], [0], [1], [0, 0, 1, 1], [], []>} : vector<2x32xbf16>, vector<32x32xbf16>, vector<2x32xf32> -> vector<2x32xf32>
    %218 = arith.addf %216, %217 : vector<2x32xf32>
    %219 = arith.negf %203 : vector<2x32xf32>
    %220 = math.exp %219 : vector<2x32xf32>
    %cst_139 = arith.constant 1.000000e+00 : f32
    %221 = vector.broadcast %cst_139 : f32 to vector<2x32xf32>
    %222 = arith.addf %221, %220 : vector<2x32xf32>
    %223 = arith.divf %221, %222 : vector<2x32xf32>
    %224 = arith.negf %208 : vector<2x32xf32>
    %225 = math.exp %224 : vector<2x32xf32>
    %cst_140 = arith.constant 1.000000e+00 : f32
    %226 = vector.broadcast %cst_140 : f32 to vector<2x32xf32>
    %227 = arith.addf %226, %225 : vector<2x32xf32>
    %228 = arith.divf %226, %227 : vector<2x32xf32>
    %229 = math.tanh %213 : vector<2x32xf32>
    %230 = arith.negf %218 : vector<2x32xf32>
    %231 = math.exp %230 : vector<2x32xf32>
    %cst_141 = arith.constant 1.000000e+00 : f32
    %232 = vector.broadcast %cst_141 : f32 to vector<2x32xf32>
    %233 = arith.addf %232, %231 : vector<2x32xf32>
    %234 = arith.divf %232, %233 : vector<2x32xf32>
    %235 = arith.mulf %228, %191 : vector<2x32xf32>
    %236 = arith.mulf %223, %229 : vector<2x32xf32>
    %237 = arith.addf %235, %236 : vector<2x32xf32>
    %238 = math.tanh %237 : vector<2x32xf32>
    %239 = arith.mulf %234, %238 : vector<2x32xf32>
    %c0_142 = arith.constant 0 : index
    %240 = arith.index_cast %c3_i32 : i32 to index
    %c0_143 = arith.constant 0 : index
    %241 = vector.load %arg9[%c0_142, %240, %c0_143] : memref<2x8x32xf32, #tpu.memory_space<vmem>>, vector<2x1x32xf32>
    %242 = vector.shape_cast %241 : vector<2x1x32xf32> to vector<2x32xf32>
    %243 = vector.shape_cast %239 : vector<2x32xf32> to vector<2x1x32xf32>
    tpu.vector_store %arg9[%c0_142, %240, %c0_143], %243 {strides = array<i32>} : memref<2x8x32xf32, #tpu.memory_space<vmem>>, vector<2x1x32xf32>,
    %c4_i32 = arith.constant 4 : i32
    %244 = arith.truncf %239 : vector<2x32xf32> to vector<2x32xbf16>
    %c0_144 = arith.constant 0 : index
    %c0_145 = arith.constant 0 : index
    %245 = arith.index_cast %c4_i32 : i32 to index
    %c0_146 = arith.constant 0 : index
    %246 = vector.load %arg8[%c0_144, %c0_145, %245, %c0_146] : memref<4x2x8x32xf32, #tpu.memory_space<vmem>>, vector<1x2x1x32xf32>
    %247 = vector.shape_cast %246 : vector<1x2x1x32xf32> to vector<2x32xf32>
    %cst_147 = arith.constant dense<0.000000e+00> : vector<2x32xf32>
    %248 = tpu.matmul %244, %51, %cst_147 {dimension_numbers = #tpu.dot_dimension_numbers<[1], [0], [0], [1], [0, 0, 1, 1], [], []>} : vector<2x32xbf16>, vector<32x32xbf16>, vector<2x32xf32> -> vector<2x32xf32>
    %249 = arith.addf %247, %248 : vector<2x32xf32>
    %c1_148 = arith.constant 1 : index
    %c0_149 = arith.constant 0 : index
    %250 = arith.index_cast %c4_i32 : i32 to index
    %c0_150 = arith.constant 0 : index
    %251 = vector.load %arg8[%c1_148, %c0_149, %250, %c0_150] : memref<4x2x8x32xf32, #tpu.memory_space<vmem>>, vector<1x2x1x32xf32>
    %252 = vector.shape_cast %251 : vector<1x2x1x32xf32> to vector<2x32xf32>
    %cst_151 = arith.constant dense<0.000000e+00> : vector<2x32xf32>
    %253 = tpu.matmul %244, %53, %cst_151 {dimension_numbers = #tpu.dot_dimension_numbers<[1], [0], [0], [1], [0, 0, 1, 1], [], []>} : vector<2x32xbf16>, vector<32x32xbf16>, vector<2x32xf32> -> vector<2x32xf32>
    %254 = arith.addf %252, %253 : vector<2x32xf32>
    %c2_152 = arith.constant 2 : index
    %c0_153 = arith.constant 0 : index
    %255 = arith.index_cast %c4_i32 : i32 to index
    %c0_154 = arith.constant 0 : index
    %256 = vector.load %arg8[%c2_152, %c0_153, %255, %c0_154] : memref<4x2x8x32xf32, #tpu.memory_space<vmem>>, vector<1x2x1x32xf32>
    %257 = vector.shape_cast %256 : vector<1x2x1x32xf32> to vector<2x32xf32>
    %cst_155 = arith.constant dense<0.000000e+00> : vector<2x32xf32>
    %258 = tpu.matmul %244, %55, %cst_155 {dimension_numbers = #tpu.dot_dimension_numbers<[1], [0], [0], [1], [0, 0, 1, 1], [], []>} : vector<2x32xbf16>, vector<32x32xbf16>, vector<2x32xf32> -> vector<2x32xf32>
    %259 = arith.addf %257, %258 : vector<2x32xf32>
    %c3_156 = arith.constant 3 : index
    %c0_157 = arith.constant 0 : index
    %260 = arith.index_cast %c4_i32 : i32 to index
    %c0_158 = arith.constant 0 : index
    %261 = vector.load %arg8[%c3_156, %c0_157, %260, %c0_158] : memref<4x2x8x32xf32, #tpu.memory_space<vmem>>, vector<1x2x1x32xf32>
    %262 = vector.shape_cast %261 : vector<1x2x1x32xf32> to vector<2x32xf32>
    %cst_159 = arith.constant dense<0.000000e+00> : vector<2x32xf32>
    %263 = tpu.matmul %244, %57, %cst_159 {dimension_numbers = #tpu.dot_dimension_numbers<[1], [0], [0], [1], [0, 0, 1, 1], [], []>} : vector<2x32xbf16>, vector<32x32xbf16>, vector<2x32xf32> -> vector<2x32xf32>
    %264 = arith.addf %262, %263 : vector<2x32xf32>
    %265 = arith.negf %249 : vector<2x32xf32>
    %266 = math.exp %265 : vector<2x32xf32>
    %cst_160 = arith.constant 1.000000e+00 : f32
    %267 = vector.broadcast %cst_160 : f32 to vector<2x32xf32>
    %268 = arith.addf %267, %266 : vector<2x32xf32>
    %269 = arith.divf %267, %268 : vector<2x32xf32>
    %270 = arith.negf %254 : vector<2x32xf32>
    %271 = math.exp %270 : vector<2x32xf32>
    %cst_161 = arith.constant 1.000000e+00 : f32
    %272 = vector.broadcast %cst_161 : f32 to vector<2x32xf32>
    %273 = arith.addf %272, %271 : vector<2x32xf32>
    %274 = arith.divf %272, %273 : vector<2x32xf32>
    %275 = math.tanh %259 : vector<2x32xf32>
    %276 = arith.negf %264 : vector<2x32xf32>
    %277 = math.exp %276 : vector<2x32xf32>
    %cst_162 = arith.constant 1.000000e+00 : f32
    %278 = vector.broadcast %cst_162 : f32 to vector<2x32xf32>
    %279 = arith.addf %278, %277 : vector<2x32xf32>
    %280 = arith.divf %278, %279 : vector<2x32xf32>
    %281 = arith.mulf %274, %237 : vector<2x32xf32>
    %282 = arith.mulf %269, %275 : vector<2x32xf32>
    %283 = arith.addf %281, %282 : vector<2x32xf32>
    %284 = math.tanh %283 : vector<2x32xf32>
    %285 = arith.mulf %280, %284 : vector<2x32xf32>
    %c0_163 = arith.constant 0 : index
    %286 = arith.index_cast %c4_i32 : i32 to index
    %c0_164 = arith.constant 0 : index
    %287 = vector.load %arg9[%c0_163, %286, %c0_164] : memref<2x8x32xf32, #tpu.memory_space<vmem>>, vector<2x1x32xf32>
    %288 = vector.shape_cast %287 : vector<2x1x32xf32> to vector<2x32xf32>
    %289 = vector.shape_cast %285 : vector<2x32xf32> to vector<2x1x32xf32>
    tpu.vector_store %arg9[%c0_163, %286, %c0_164], %289 {strides = array<i32>} : memref<2x8x32xf32, #tpu.memory_space<vmem>>, vector<2x1x32xf32>,
    %c5_i32 = arith.constant 5 : i32
    %290 = arith.truncf %285 : vector<2x32xf32> to vector<2x32xbf16>
    %c0_165 = arith.constant 0 : index
    %c0_166 = arith.constant 0 : index
    %291 = arith.index_cast %c5_i32 : i32 to index
    %c0_167 = arith.constant 0 : index
    %292 = vector.load %arg8[%c0_165, %c0_166, %291, %c0_167] : memref<4x2x8x32xf32, #tpu.memory_space<vmem>>, vector<1x2x1x32xf32>
    %293 = vector.shape_cast %292 : vector<1x2x1x32xf32> to vector<2x32xf32>
    %cst_168 = arith.constant dense<0.000000e+00> : vector<2x32xf32>
    %294 = tpu.matmul %290, %51, %cst_168 {dimension_numbers = #tpu.dot_dimension_numbers<[1], [0], [0], [1], [0, 0, 1, 1], [], []>} : vector<2x32xbf16>, vector<32x32xbf16>, vector<2x32xf32> -> vector<2x32xf32>
    %295 = arith.addf %293, %294 : vector<2x32xf32>
    %c1_169 = arith.constant 1 : index
    %c0_170 = arith.constant 0 : index
    %296 = arith.index_cast %c5_i32 : i32 to index
    %c0_171 = arith.constant 0 : index
    %297 = vector.load %arg8[%c1_169, %c0_170, %296, %c0_171] : memref<4x2x8x32xf32, #tpu.memory_space<vmem>>, vector<1x2x1x32xf32>
    %298 = vector.shape_cast %297 : vector<1x2x1x32xf32> to vector<2x32xf32>
    %cst_172 = arith.constant dense<0.000000e+00> : vector<2x32xf32>
    %299 = tpu.matmul %290, %53, %cst_172 {dimension_numbers = #tpu.dot_dimension_numbers<[1], [0], [0], [1], [0, 0, 1, 1], [], []>} : vector<2x32xbf16>, vector<32x32xbf16>, vector<2x32xf32> -> vector<2x32xf32>
    %300 = arith.addf %298, %299 : vector<2x32xf32>
    %c2_173 = arith.constant 2 : index
    %c0_174 = arith.constant 0 : index
    %301 = arith.index_cast %c5_i32 : i32 to index
    %c0_175 = arith.constant 0 : index
    %302 = vector.load %arg8[%c2_173, %c0_174, %301, %c0_175] : memref<4x2x8x32xf32, #tpu.memory_space<vmem>>, vector<1x2x1x32xf32>
    %303 = vector.shape_cast %302 : vector<1x2x1x32xf32> to vector<2x32xf32>
    %cst_176 = arith.constant dense<0.000000e+00> : vector<2x32xf32>
    %304 = tpu.matmul %290, %55, %cst_176 {dimension_numbers = #tpu.dot_dimension_numbers<[1], [0], [0], [1], [0, 0, 1, 1], [], []>} : vector<2x32xbf16>, vector<32x32xbf16>, vector<2x32xf32> -> vector<2x32xf32>
    %305 = arith.addf %303, %304 : vector<2x32xf32>
    %c3_177 = arith.constant 3 : index
    %c0_178 = arith.constant 0 : index
    %306 = arith.index_cast %c5_i32 : i32 to index
    %c0_179 = arith.constant 0 : index
    %307 = vector.load %arg8[%c3_177, %c0_178, %306, %c0_179] : memref<4x2x8x32xf32, #tpu.memory_space<vmem>>, vector<1x2x1x32xf32>
    %308 = vector.shape_cast %307 : vector<1x2x1x32xf32> to vector<2x32xf32>
    %cst_180 = arith.constant dense<0.000000e+00> : vector<2x32xf32>
    %309 = tpu.matmul %290, %57, %cst_180 {dimension_numbers = #tpu.dot_dimension_numbers<[1], [0], [0], [1], [0, 0, 1, 1], [], []>} : vector<2x32xbf16>, vector<32x32xbf16>, vector<2x32xf32> -> vector<2x32xf32>
    %310 = arith.addf %308, %309 : vector<2x32xf32>
    %311 = arith.negf %295 : vector<2x32xf32>
    %312 = math.exp %311 : vector<2x32xf32>
    %cst_181 = arith.constant 1.000000e+00 : f32
    %313 = vector.broadcast %cst_181 : f32 to vector<2x32xf32>
    %314 = arith.addf %313, %312 : vector<2x32xf32>
    %315 = arith.divf %313, %314 : vector<2x32xf32>
    %316 = arith.negf %300 : vector<2x32xf32>
    %317 = math.exp %316 : vector<2x32xf32>
    %cst_182 = arith.constant 1.000000e+00 : f32
    %318 = vector.broadcast %cst_182 : f32 to vector<2x32xf32>
    %319 = arith.addf %318, %317 : vector<2x32xf32>
    %320 = arith.divf %318, %319 : vector<2x32xf32>
    %321 = math.tanh %305 : vector<2x32xf32>
    %322 = arith.negf %310 : vector<2x32xf32>
    %323 = math.exp %322 : vector<2x32xf32>
    %cst_183 = arith.constant 1.000000e+00 : f32
    %324 = vector.broadcast %cst_183 : f32 to vector<2x32xf32>
    %325 = arith.addf %324, %323 : vector<2x32xf32>
    %326 = arith.divf %324, %325 : vector<2x32xf32>
    %327 = arith.mulf %320, %283 : vector<2x32xf32>
    %328 = arith.mulf %315, %321 : vector<2x32xf32>
    %329 = arith.addf %327, %328 : vector<2x32xf32>
    %330 = math.tanh %329 : vector<2x32xf32>
    %331 = arith.mulf %326, %330 : vector<2x32xf32>
    %c0_184 = arith.constant 0 : index
    %332 = arith.index_cast %c5_i32 : i32 to index
    %c0_185 = arith.constant 0 : index
    %333 = vector.load %arg9[%c0_184, %332, %c0_185] : memref<2x8x32xf32, #tpu.memory_space<vmem>>, vector<2x1x32xf32>
    %334 = vector.shape_cast %333 : vector<2x1x32xf32> to vector<2x32xf32>
    %335 = vector.shape_cast %331 : vector<2x32xf32> to vector<2x1x32xf32>
    tpu.vector_store %arg9[%c0_184, %332, %c0_185], %335 {strides = array<i32>} : memref<2x8x32xf32, #tpu.memory_space<vmem>>, vector<2x1x32xf32>,
    %c6_i32 = arith.constant 6 : i32
    %336 = arith.truncf %331 : vector<2x32xf32> to vector<2x32xbf16>
    %c0_186 = arith.constant 0 : index
    %c0_187 = arith.constant 0 : index
    %337 = arith.index_cast %c6_i32 : i32 to index
    %c0_188 = arith.constant 0 : index
    %338 = vector.load %arg8[%c0_186, %c0_187, %337, %c0_188] : memref<4x2x8x32xf32, #tpu.memory_space<vmem>>, vector<1x2x1x32xf32>
    %339 = vector.shape_cast %338 : vector<1x2x1x32xf32> to vector<2x32xf32>
    %cst_189 = arith.constant dense<0.000000e+00> : vector<2x32xf32>
    %340 = tpu.matmul %336, %51, %cst_189 {dimension_numbers = #tpu.dot_dimension_numbers<[1], [0], [0], [1], [0, 0, 1, 1], [], []>} : vector<2x32xbf16>, vector<32x32xbf16>, vector<2x32xf32> -> vector<2x32xf32>
    %341 = arith.addf %339, %340 : vector<2x32xf32>
    %c1_190 = arith.constant 1 : index
    %c0_191 = arith.constant 0 : index
    %342 = arith.index_cast %c6_i32 : i32 to index
    %c0_192 = arith.constant 0 : index
    %343 = vector.load %arg8[%c1_190, %c0_191, %342, %c0_192] : memref<4x2x8x32xf32, #tpu.memory_space<vmem>>, vector<1x2x1x32xf32>
    %344 = vector.shape_cast %343 : vector<1x2x1x32xf32> to vector<2x32xf32>
    %cst_193 = arith.constant dense<0.000000e+00> : vector<2x32xf32>
    %345 = tpu.matmul %336, %53, %cst_193 {dimension_numbers = #tpu.dot_dimension_numbers<[1], [0], [0], [1], [0, 0, 1, 1], [], []>} : vector<2x32xbf16>, vector<32x32xbf16>, vector<2x32xf32> -> vector<2x32xf32>
    %346 = arith.addf %344, %345 : vector<2x32xf32>
    %c2_194 = arith.constant 2 : index
    %c0_195 = arith.constant 0 : index
    %347 = arith.index_cast %c6_i32 : i32 to index
    %c0_196 = arith.constant 0 : index
    %348 = vector.load %arg8[%c2_194, %c0_195, %347, %c0_196] : memref<4x2x8x32xf32, #tpu.memory_space<vmem>>, vector<1x2x1x32xf32>
    %349 = vector.shape_cast %348 : vector<1x2x1x32xf32> to vector<2x32xf32>
    %cst_197 = arith.constant dense<0.000000e+00> : vector<2x32xf32>
    %350 = tpu.matmul %336, %55, %cst_197 {dimension_numbers = #tpu.dot_dimension_numbers<[1], [0], [0], [1], [0, 0, 1, 1], [], []>} : vector<2x32xbf16>, vector<32x32xbf16>, vector<2x32xf32> -> vector<2x32xf32>
    %351 = arith.addf %349, %350 : vector<2x32xf32>
    %c3_198 = arith.constant 3 : index
    %c0_199 = arith.constant 0 : index
    %352 = arith.index_cast %c6_i32 : i32 to index
    %c0_200 = arith.constant 0 : index
    %353 = vector.load %arg8[%c3_198, %c0_199, %352, %c0_200] : memref<4x2x8x32xf32, #tpu.memory_space<vmem>>, vector<1x2x1x32xf32>
    %354 = vector.shape_cast %353 : vector<1x2x1x32xf32> to vector<2x32xf32>
    %cst_201 = arith.constant dense<0.000000e+00> : vector<2x32xf32>
    %355 = tpu.matmul %336, %57, %cst_201 {dimension_numbers = #tpu.dot_dimension_numbers<[1], [0], [0], [1], [0, 0, 1, 1], [], []>} : vector<2x32xbf16>, vector<32x32xbf16>, vector<2x32xf32> -> vector<2x32xf32>
    %356 = arith.addf %354, %355 : vector<2x32xf32>
    %357 = arith.negf %341 : vector<2x32xf32>
    %358 = math.exp %357 : vector<2x32xf32>
    %cst_202 = arith.constant 1.000000e+00 : f32
    %359 = vector.broadcast %cst_202 : f32 to vector<2x32xf32>
    %360 = arith.addf %359, %358 : vector<2x32xf32>
    %361 = arith.divf %359, %360 : vector<2x32xf32>
    %362 = arith.negf %346 : vector<2x32xf32>
    %363 = math.exp %362 : vector<2x32xf32>
    %cst_203 = arith.constant 1.000000e+00 : f32
    %364 = vector.broadcast %cst_203 : f32 to vector<2x32xf32>
    %365 = arith.addf %364, %363 : vector<2x32xf32>
    %366 = arith.divf %364, %365 : vector<2x32xf32>
    %367 = math.tanh %351 : vector<2x32xf32>
    %368 = arith.negf %356 : vector<2x32xf32>
    %369 = math.exp %368 : vector<2x32xf32>
    %cst_204 = arith.constant 1.000000e+00 : f32
    %370 = vector.broadcast %cst_204 : f32 to vector<2x32xf32>
    %371 = arith.addf %370, %369 : vector<2x32xf32>
    %372 = arith.divf %370, %371 : vector<2x32xf32>
    %373 = arith.mulf %366, %329 : vector<2x32xf32>
    %374 = arith.mulf %361, %367 : vector<2x32xf32>
    %375 = arith.addf %373, %374 : vector<2x32xf32>
    %376 = math.tanh %375 : vector<2x32xf32>
    %377 = arith.mulf %372, %376 : vector<2x32xf32>
    %c0_205 = arith.constant 0 : index
    %378 = arith.index_cast %c6_i32 : i32 to index
    %c0_206 = arith.constant 0 : index
    %379 = vector.load %arg9[%c0_205, %378, %c0_206] : memref<2x8x32xf32, #tpu.memory_space<vmem>>, vector<2x1x32xf32>
    %380 = vector.shape_cast %379 : vector<2x1x32xf32> to vector<2x32xf32>
    %381 = vector.shape_cast %377 : vector<2x32xf32> to vector<2x1x32xf32>
    tpu.vector_store %arg9[%c0_205, %378, %c0_206], %381 {strides = array<i32>} : memref<2x8x32xf32, #tpu.memory_space<vmem>>, vector<2x1x32xf32>,
    %c7_i32 = arith.constant 7 : i32
    %382 = arith.truncf %377 : vector<2x32xf32> to vector<2x32xbf16>
    %c0_207 = arith.constant 0 : index
    %c0_208 = arith.constant 0 : index
    %383 = arith.index_cast %c7_i32 : i32 to index
    %c0_209 = arith.constant 0 : index
    %384 = vector.load %arg8[%c0_207, %c0_208, %383, %c0_209] : memref<4x2x8x32xf32, #tpu.memory_space<vmem>>, vector<1x2x1x32xf32>
    %385 = vector.shape_cast %384 : vector<1x2x1x32xf32> to vector<2x32xf32>
    %cst_210 = arith.constant dense<0.000000e+00> : vector<2x32xf32>
    %386 = tpu.matmul %382, %51, %cst_210 {dimension_numbers = #tpu.dot_dimension_numbers<[1], [0], [0], [1], [0, 0, 1, 1], [], []>} : vector<2x32xbf16>, vector<32x32xbf16>, vector<2x32xf32> -> vector<2x32xf32>
    %387 = arith.addf %385, %386 : vector<2x32xf32>
    %c1_211 = arith.constant 1 : index
    %c0_212 = arith.constant 0 : index
    %388 = arith.index_cast %c7_i32 : i32 to index
    %c0_213 = arith.constant 0 : index
    %389 = vector.load %arg8[%c1_211, %c0_212, %388, %c0_213] : memref<4x2x8x32xf32, #tpu.memory_space<vmem>>, vector<1x2x1x32xf32>
    %390 = vector.shape_cast %389 : vector<1x2x1x32xf32> to vector<2x32xf32>
    %cst_214 = arith.constant dense<0.000000e+00> : vector<2x32xf32>
    %391 = tpu.matmul %382, %53, %cst_214 {dimension_numbers = #tpu.dot_dimension_numbers<[1], [0], [0], [1], [0, 0, 1, 1], [], []>} : vector<2x32xbf16>, vector<32x32xbf16>, vector<2x32xf32> -> vector<2x32xf32>
    %392 = arith.addf %390, %391 : vector<2x32xf32>
    %c2_215 = arith.constant 2 : index
    %c0_216 = arith.constant 0 : index
    %393 = arith.index_cast %c7_i32 : i32 to index
    %c0_217 = arith.constant 0 : index
    %394 = vector.load %arg8[%c2_215, %c0_216, %393, %c0_217] : memref<4x2x8x32xf32, #tpu.memory_space<vmem>>, vector<1x2x1x32xf32>
    %395 = vector.shape_cast %394 : vector<1x2x1x32xf32> to vector<2x32xf32>
    %cst_218 = arith.constant dense<0.000000e+00> : vector<2x32xf32>
    %396 = tpu.matmul %382, %55, %cst_218 {dimension_numbers = #tpu.dot_dimension_numbers<[1], [0], [0], [1], [0, 0, 1, 1], [], []>} : vector<2x32xbf16>, vector<32x32xbf16>, vector<2x32xf32> -> vector<2x32xf32>
    %397 = arith.addf %395, %396 : vector<2x32xf32>
    %c3_219 = arith.constant 3 : index
    %c0_220 = arith.constant 0 : index
    %398 = arith.index_cast %c7_i32 : i32 to index
    %c0_221 = arith.constant 0 : index
    %399 = vector.load %arg8[%c3_219, %c0_220, %398, %c0_221] : memref<4x2x8x32xf32, #tpu.memory_space<vmem>>, vector<1x2x1x32xf32>
    %400 = vector.shape_cast %399 : vector<1x2x1x32xf32> to vector<2x32xf32>
    %cst_222 = arith.constant dense<0.000000e+00> : vector<2x32xf32>
    %401 = tpu.matmul %382, %57, %cst_222 {dimension_numbers = #tpu.dot_dimension_numbers<[1], [0], [0], [1], [0, 0, 1, 1], [], []>} : vector<2x32xbf16>, vector<32x32xbf16>, vector<2x32xf32> -> vector<2x32xf32>
    %402 = arith.addf %400, %401 : vector<2x32xf32>
    %403 = arith.negf %387 : vector<2x32xf32>
    %404 = math.exp %403 : vector<2x32xf32>
    %cst_223 = arith.constant 1.000000e+00 : f32
    %405 = vector.broadcast %cst_223 : f32 to vector<2x32xf32>
    %406 = arith.addf %405, %404 : vector<2x32xf32>
    %407 = arith.divf %405, %406 : vector<2x32xf32>
    %408 = arith.negf %392 : vector<2x32xf32>
    %409 = math.exp %408 : vector<2x32xf32>
    %cst_224 = arith.constant 1.000000e+00 : f32
    %410 = vector.broadcast %cst_224 : f32 to vector<2x32xf32>
    %411 = arith.addf %410, %409 : vector<2x32xf32>
    %412 = arith.divf %410, %411 : vector<2x32xf32>
    %413 = math.tanh %397 : vector<2x32xf32>
    %414 = arith.negf %402 : vector<2x32xf32>
    %415 = math.exp %414 : vector<2x32xf32>
    %cst_225 = arith.constant 1.000000e+00 : f32
    %416 = vector.broadcast %cst_225 : f32 to vector<2x32xf32>
    %417 = arith.addf %416, %415 : vector<2x32xf32>
    %418 = arith.divf %416, %417 : vector<2x32xf32>
    %419 = arith.mulf %412, %375 : vector<2x32xf32>
    %420 = arith.mulf %407, %413 : vector<2x32xf32>
    %421 = arith.addf %419, %420 : vector<2x32xf32>
    %422 = math.tanh %421 : vector<2x32xf32>
    %423 = arith.mulf %418, %422 : vector<2x32xf32>
    %c0_226 = arith.constant 0 : index
    %424 = arith.index_cast %c7_i32 : i32 to index
    %c0_227 = arith.constant 0 : index
    %425 = vector.load %arg9[%c0_226, %424, %c0_227] : memref<2x8x32xf32, #tpu.memory_space<vmem>>, vector<2x1x32xf32>
    %426 = vector.shape_cast %425 : vector<2x1x32xf32> to vector<2x32xf32>
    %427 = vector.shape_cast %423 : vector<2x32xf32> to vector<2x1x32xf32>
    tpu.vector_store %arg9[%c0_226, %424, %c0_227], %427 {strides = array<i32>} : memref<2x8x32xf32, #tpu.memory_space<vmem>>, vector<2x1x32xf32>,
    %c8_i32 = arith.constant 8 : i32
    %c0_228 = arith.constant 0 : index
    %c0_229 = arith.constant 0 : index
    %428 = vector.load %arg6[%c0_228, %c0_229] : memref<2x32xf32, #tpu.memory_space<vmem>>, vector<2x32xf32>
    tpu.vector_store %arg6[%c0_228, %c0_229], %423 {strides = array<i32>} : memref<2x32xf32, #tpu.memory_space<vmem>>, vector<2x32xf32>,
    %c0_230 = arith.constant 0 : index
    %c0_231 = arith.constant 0 : index
    %429 = vector.load %arg7[%c0_230, %c0_231] : memref<2x32xf32, #tpu.memory_space<vmem>>, vector<2x32xf32>
    tpu.vector_store %arg7[%c0_230, %c0_231], %421 {strides = array<i32>} : memref<2x32xf32, #tpu.memory_space<vmem>>, vector<2x32xf32>,
    %c0_232 = arith.constant 0 : index
    %c0_233 = arith.constant 0 : index
    %c0_234 = arith.constant 0 : index
    %430 = vector.load %arg9[%c0_232, %c0_233, %c0_234] : memref<2x8x32xf32, #tpu.memory_space<vmem>>, vector<2x8x32xf32>
    %431 = arith.truncf %430 : vector<2x8x32xf32> to vector<2x8x32xbf16>
    %c0_235 = arith.constant 0 : index
    %c0_236 = arith.constant 0 : index
    %c0_237 = arith.constant 0 : index
    %432 = vector.load %arg5[%c0_235, %c0_236, %c0_237] : memref<2x8x32xbf16, #tpu.memory_space<vmem>>, vector<2x8x32xbf16>
    tpu.vector_store %arg5[%c0_235, %c0_236, %c0_237], %431 {strides = array<i32>} : memref<2x8x32xbf16, #tpu.memory_space<vmem>>, vector<2x8x32xbf16>,
    return
  }
  func.func @transform_0(%arg0: i32) -> (i32, i32, i32) {
    %c0_i32 = arith.constant 0 : i32
    %c0_i32_0 = arith.constant 0 : i32
    %c0_i32_1 = arith.constant 0 : i32
    return %c0_i32, %arg0, %c0_i32_0 : i32, i32, i32
  }
  func.func @transform_1(%arg0: i32) -> (i32, i32, i32) {
    %c0_i32 = arith.constant 0 : i32
    %c0_i32_0 = arith.constant 0 : i32
    %c0_i32_1 = arith.constant 0 : i32
    %c0_i32_2 = arith.constant 0 : i32
    return %c0_i32, %c0_i32_0, %c0_i32_1 : i32, i32, i32
  }
  func.func @transform_2(%arg0: i32) -> (i32, i32, i32) {
    %c0_i32 = arith.constant 0 : i32
    %c0_i32_0 = arith.constant 0 : i32
    %c0_i32_1 = arith.constant 0 : i32
    %c0_i32_2 = arith.constant 0 : i32
    return %c0_i32, %c0_i32_0, %c0_i32_1 : i32, i32, i32
  }
  func.func @transform_3(%arg0: i32) -> (i32, i32, i32) {
    %c0_i32 = arith.constant 0 : i32
    %c0_i32_0 = arith.constant 0 : i32
    %c0_i32_1 = arith.constant 0 : i32
    %c0_i32_2 = arith.constant 0 : i32
    return %c0_i32, %c0_i32_0, %c0_i32_1 : i32, i32, i32
  }
  func.func @transform_4(%arg0: i32) -> (i32, i32, i32) {
    %c0_i32 = arith.constant 0 : i32
    %c0_i32_0 = arith.constant 0 : i32
    %c0_i32_1 = arith.constant 0 : i32
    return %c0_i32, %arg0, %c0_i32_0 : i32, i32, i32
  }
}

</mosaic_0001>

<bundles_post_ra>
// kernel: tpu_custom_call.1
= control target key start
LH: loop header
LB: loop body
LE: loop exit
PB: predicated region body
PF: predicated region fallthrough
CT: control target
= control target key end

     0   :  { %9 = vsyncpa [#allocation7], 0  ;;  %s3791_s0 = inlined_call_operand.hbm [shape: f32[2,8,16], index: 0, kind: input, shape index: {}]   ;;  %s3792_s1 = inlined_call_operand.hbm [shape: bf16[4,16,32], index: 1, kind: input, shape index: {}]   ;;  %s3793_s2 = inlined_call_operand.hbm [shape: bf16[4,32,32], index: 2, kind: input, shape index: {}]   ;;  %s3794_s3 = inlined_call_operand.vmem [shape: f32[4,1,32], index: 3, kind: input, shape index: {}]   ;;  %s3795_s4 = inlined_call_operand.hbm [shape: bf16[2,8,32], index: 4, kind: output, shape index: {}]  }
   0x1   :  { %10 = vsyncpa [#allocation10], 0 }
   0x2   :  { %11 = vsyncpa [#allocation8], 0  ;;  %s3320_s15 = smov [#allocation9]   ;;  %s3226_s19 = scalar_lea.hbm %s3792_s1, 512 }
   0x3   :  { %s29_s16 = sshll.u32 %s3320_s15, 4  ;;  %p3227_p0 = scmp.ne.s32.totalorder %s3792_s1, %s3226_s19  ;;  %s30_s16 = int_to_ptr.vmem [resolvable:$true] %s29_s16 }
   0x4   :  { %p3230_p1 = scmp.lt.u32.totalorder %s3226_s19, %s3792_s1 }
   0x6   :  { %p3232_p2 = pnand %p3230_p1, %p3227_p0 }
   0x8   :  { %3235 = shalt.err (!%p3232_p2)
}
   0x9   :  { %s3236_s24 = scalar_lea.vmem %s30_s16, 512  ;;  %p3241_p4 = scmp.lt.s32.totalorder %s30_s16, %s30_s16 }
   0xa   :  { %p3237_p3 = scmp.ne.s32.totalorder %s30_s16, %s3236_s24  ;;  %p3242_p5 = scmp.lt.s32.totalorder %s3236_s24, %s3236_s24 }
   0xc   :  { %p3243_p6 = por %p3242_p5, %p3241_p4 }
   0xe   :  { %p3244_p7 = pnand %p3243_p6, %p3237_p3 }
  0x10   :  { %3247 = shalt.err (!%p3244_p7)
}
  0x11   :  { %s3321_s25 = smov 64   ;;  %s3322_s26 = smov 4  }
  0x12   :  { %35 = dma.hbm_to_vmem [thread:$0]  %s3792_s1, 512, %s30_s16, [#allocation10], %s3321_s25, %s3321_s25, %s3322_s26  }
  0x13   :  { %s3323_s29 = smov [#allocation6]   ;;  %s3248_s7 = scalar_lea.hbm %s3791_s0, 256 }
  0x14   :  { %s17_s30 = sshll.u32 %s3323_s29, 4  ;;  %p3249_p8 = scmp.ne.s32.totalorder %s3791_s0, %s3248_s7  ;;  %s18_s30 = int_to_ptr.vmem [resolvable:$true] %s17_s30 }
  0x15   :  { %p3252_p9 = scmp.lt.u32.totalorder %s3248_s7, %s3791_s0 }
  0x17   :  { %p3254_p10 = pnand %p3252_p9, %p3249_p8 }
  0x19   :  { %3257 = shalt.err (!%p3254_p10)
}
  0x1a   :  { %s3258_s12 = scalar_lea.vmem %s18_s30, 256  ;;  %p3263_p12 = scmp.lt.s32.totalorder %s18_s30, %s18_s30 }
  0x1b   :  { %p3259_p11 = scmp.ne.s32.totalorder %s18_s30, %s3258_s12  ;;  %p3264_p13 = scmp.lt.s32.totalorder %s3258_s12, %s3258_s12 }
  0x1d   :  { %p3265_p0 = por %p3264_p13, %p3263_p12 }
  0x1f   :  { %p3266_p1 = pnand %p3265_p0, %p3259_p11 }
  0x21   :  { %3269 = shalt.err (!%p3266_p1)
}
  0x22   :  { %s3324_s1 = smov 128   ;;  %s3325_s13 = smov 8  }
  0x23   :  { %23 = dma.hbm_to_vmem [thread:$0]  %s3791_s0, 256, %s18_s30, [#allocation7], %s3324_s1, %s3324_s1, %s3325_s13  }
  0x24   :  { %s3326_s16 = smov [#allocation11]   ;;  %s3270_s20 = scalar_lea.hbm %s3793_s2, 1024 }
  0x25   :  { %s41_s17 = sshll.u32 %s3326_s16, 4  ;;  %p3271_p2 = scmp.ne.s32.totalorder %s3793_s2, %s3270_s20  ;;  %s42_s17 = int_to_ptr.vmem [resolvable:$true] %s41_s17 }
  0x26   :  { %p3274_p3 = scmp.lt.u32.totalorder %s3270_s20, %s3793_s2 }
  0x28   :  { %p3276_p4 = pnand %p3274_p3, %p3271_p2 }
  0x2a   :  { %3279 = shalt.err (!%p3276_p4)
}
  0x2b   :  { %s3280_s27 = scalar_lea.vmem %s42_s17, 1024  ;;  %p3285_p6 = scmp.lt.s32.totalorder %s42_s17, %s42_s17 }
  0x2c   :  { %p3281_p5 = scmp.ne.s32.totalorder %s42_s17, %s3280_s27  ;;  %p3286_p7 = scmp.lt.s32.totalorder %s3280_s27, %s3280_s27 }
  0x2e   :  { %p3287_p8 = por %p3286_p7, %p3285_p6 }
  0x30   :  { %p3288_p9 = pnand %p3287_p8, %p3281_p5 }
  0x32   :  { %3291 = shalt.err (!%p3288_p9)
}
  0x33   :  { %47 = dma.hbm_to_vmem [thread:$0]  %s3793_s2, 1024, %s42_s17, [#allocation10], %s3321_s25, %s3321_s25, %s3322_s26  }
  0x34   :  { %3314 = dma.done.wait [#allocation7], 256  }
  0x35   :  { %3315 = vsyncadd [#allocation7], 4294967040 }
  0x36   :  { %3316 = dma.done.wait [#allocation10], 1536  }
  0x37   :  { %3317 = vsyncadd [#allocation10], 4294965760  ;;  %vm64_vm0 = vcmask 254976   ;;  %v3327_v0 = vmov 0.0   ;;  %vm3328_vm1 = vmmov 0   ;;  %v2950_v1 = vld [vmem:[#allocation9] sm:$0xff]  }
  0x38   :  { %2660 = vmatprep.subr.bf16.mxu0 %v3327_v0  ;;  %2666 = vmatprep.subr.bf16.mxu1 %v3327_v0  ;;  %65 = vst.msk [vmem:[#allocation2] sm:$0x3] %vm64_vm0, %v3327_v0  ;;  %66 = vst.msk [vmem:[#allocation3] sm:$0x3] %vm64_vm0, %v3327_v0  ;;  %v2951_v2 = vld [vmem:[#allocation9 + $0x8] sm:$0xff]   ;;  %v67_v3 = vld [vmem:[#allocation6] sm:$0xff] }
  0x39   :  { %2662 = vmatprep.mubr.msk.bf16.mxu0 %vm3328_vm1, %v3327_v0  ;;  %2668 = vmatprep.mubr.msk.bf16.mxu1 %vm3328_vm1, %v3327_v0  ;;  %v68_v4 = vld [vmem:[#allocation6 + $0x8] sm:$0xff]  ;;  %vm85_vm2 = vcmask 130048   ;;  %v2952_v6 = vld [vmem:[#allocation9 + $0x10] sm:$0xff]   ;;  %v3417_v8 = vld [vmem:[#allocation11] sm:$0xff]   ;;  %vm130_vm3 = vcmask 261120   ;;  %vm633_vm4 = vcmask 253952  }
  0x3a   :  { %2661 = vmatpush3.bf16.msra.mxu0 %v2950_v1  ;;  %2667 = vmatpush3.bf16.msra.mxu1 %v2951_v2  ;;  %v69_v5 = vpack.c.bf16 %v68_v4, %v67_v3  ;;  %v2953_v7 = vld [vmem:[#allocation9 + $0x18] sm:$0xff]   ;;  %v3419_v9 = vld [vmem:[#allocation11 + $0x10] sm:$0xff]   ;;  %v3424_v10 = vld [vmem:[#allocation11 + $0x8] sm:$0xff]   ;;  %vm645_vm5 = vcmask 1041409   ;;  %vm2432_vm6 = vcmask 257024  }
  0x3b   :  { %2672 = vmatprep.subr.bf16.mxu0 %v3327_v0  ;;  %2678 = vmatprep.subr.bf16.mxu1 %v3327_v0  ;;  %v3428_v12 = vld [vmem:[#allocation11 + $0x18] sm:$0xff]   ;;  %v3436_v14 = vld [vmem:[#allocation11 + $0x20] sm:$0xff]   ;;  %v3440_v15 = vld [vmem:[#allocation11 + $0x30] sm:$0xff]  }
  0x3c   :  { %v3446_v16 = vld [vmem:[#allocation11 + $0x28] sm:$0xff]   ;;  %v3450_v17 = vld [vmem:[#allocation11 + $0x38] sm:$0xff]  }
  0x3d   :  { %2663 = vmatmul.mubr.msk.bf16.vlgmr.msra.gmra.mrb[0].mxu0 %vm85_vm2, %v69_v5  ;;  %2669 = vmatmul.mubr.msk.bf16.vlgmr.msra.gmra.mrb[0].mxu1 %vm85_vm2, %v69_v5  ;;  %v2453_v18 = vld [vmem:[%s3794_s3] ss:$0 sm:$0xff]  ;;  %v2457_v19 = vld [vmem:[%s3794_s3 + $0x1] ss:$0 sm:$0xff]  ;;  %v2461_v32 = vld [vmem:[%s3794_s3 + $0x2] ss:$0 sm:$0xff] }
  0x3e   :  { %2673 = vmatpush3.bf16.msra.mxu0 %v2952_v6  ;;  %2679 = vmatpush3.bf16.msra.mxu1 %v2953_v7  ;;  %v2465_v33 = vld [vmem:[%s3794_s3 + $0x3] ss:$0 sm:$0xff]  ;;  %s3329_s3 = smov [#allocation12]  }
  0x3f   :  { %2674 = vmatprep.mubr.msk.bf16.mxu0 %vm3328_vm1, %v3327_v0  ;;  %2680 = vmatprep.mubr.msk.bf16.mxu1 %vm3328_vm1, %v3327_v0  ;;  %v335_v11 = vld [vmem:[#allocation2] sm:$0x3]  ;;  %s2440_s10 = sshll.u32 %s3329_s3, 4  ;;  %s2441_s10 = int_to_ptr.vmem [resolvable:$true] %s2440_s10 }
  0x40   :  { %2684 = vmatprep.subr.bf16.mxu0 %v3327_v0  ;;  %2692 = vmatprep.subr.bf16.mxu1 %v3327_v0  ;;  %v337_v13 = vpack.c.bf16 %v335_v11, %v335_v11  ;;  %s3292_s11 = scalar_lea.vmem %s2441_s10, 128  ;;  %p3297_p11 = scmp.lt.s32.totalorder %s2441_s10, %s2441_s10 }
  0x41   :  { %p3293_p10 = scmp.ne.s32.totalorder %s2441_s10, %s3292_s11  ;;  %p3298_p12 = scmp.lt.s32.totalorder %s3292_s11, %s3292_s11 }
  0x43   :  { %p3299_p13 = por %p3298_p12, %p3297_p11 }
  0x45   :  { %2675 = vmatmul.mubr.msk.bf16.vlgmr.msra.gmra.mrb[4].mxu0 %vm85_vm2, %v69_v5  ;;  %2681 = vmatmul.mubr.msk.bf16.vlgmr.msra.gmra.mrb[4].mxu1 %vm85_vm2, %v69_v5  ;;  %p3300_p0 = pnand %p3299_p13, %p3293_p10 }
  0x46   :  { %2685 = vmatpush3.bf16.msra.mxu0 %v3417_v8  ;;  %2693 = vmatpush3.bf16.msra.mxu1 %v3419_v9 }
  0x47   :  { %2686 = vmatprep.subr.bf16.mxu0 %v3327_v0  ;;  %2694 = vmatprep.subr.bf16.mxu1 %v3327_v0 }
  0x48   :  { %2688 = vmatprep.mubr.msk.bf16.mxu0 %vm3328_vm1, %v3327_v0  ;;  %2696 = vmatprep.mubr.msk.bf16.mxu1 %vm3328_vm1, %v3327_v0 }
  0x4a   :  { %2687 = vmatpush3.bf16.msra.mxu0 %v3424_v10  ;;  %2695 = vmatpush3.bf16.msra.mxu1 %v3428_v12 }
  0x4b   :  { %2700 = vmatprep.subr.bf16.mxu0 %v3327_v0  ;;  %2708 = vmatprep.subr.bf16.mxu1 %v3327_v0 }
  0x4d   :  { %2689 = vmatmul.mubr.msk.bf16.vlgmr.msra.gmra.mrb[8].mxu0 %vm130_vm3, %v337_v13  ;;  %2697 = vmatmul.mubr.msk.bf16.vlgmr.msra.gmra.mrb[8].mxu1 %vm130_vm3, %v337_v13 }
  0x4e   :  { %2701 = vmatpush3.bf16.msra.mxu0 %v3436_v14  ;;  %2709 = vmatpush3.bf16.msra.mxu1 %v3440_v15 }
  0x4f   :  { %2702 = vmatprep.subr.bf16.mxu0 %v3327_v0  ;;  %2710 = vmatprep.subr.bf16.mxu1 %v3327_v0 }
  0x50   :  { %2704 = vmatprep.mubr.msk.bf16.mxu0 %vm3328_vm1, %v3327_v0  ;;  %2712 = vmatprep.mubr.msk.bf16.mxu1 %vm3328_vm1, %v3327_v0 }
  0x52   :  { %2703 = vmatpush3.bf16.msra.mxu0 %v3446_v16  ;;  %2711 = vmatpush3.bf16.msra.mxu1 %v3450_v17 }
  0x53   :  { %2716 = vmatprep.subr.bf16.mxu0 %v3327_v0  ;;  %2724 = vmatprep.subr.bf16.mxu1 %v3327_v0 }
  0x55   :  { %2705 = vmatmul.mubr.msk.bf16.vlgmr.msra.gmra.mrb[12].mxu0 %vm130_vm3, %v337_v13  ;;  %2713 = vmatmul.mubr.msk.bf16.vlgmr.msra.gmra.mrb[12].mxu1 %vm130_vm3, %v337_v13 }
  0x56   :  { %2717 = vmatpush3.bf16.msra.mxu0 %v3417_v8  ;;  %2725 = vmatpush3.bf16.msra.mxu1 %v3419_v9 }
  0x57   :  { %2718 = vmatprep.subr.bf16.mxu0 %v3327_v0  ;;  %2726 = vmatprep.subr.bf16.mxu1 %v3327_v0 }
  0x58   :  { %2720 = vmatprep.mubr.msk.bf16.mxu0 %vm3328_vm1, %v3327_v0  ;;  %2728 = vmatprep.mubr.msk.bf16.mxu1 %vm3328_vm1, %v3327_v0 }
  0x5a   :  { %2719 = vmatpush3.bf16.msra.mxu0 %v3424_v10  ;;  %2727 = vmatpush3.bf16.msra.mxu1 %v3428_v12 }
  0x5b   :  { %2732 = vmatprep.subr.bf16.mxu0 %v3327_v0  ;;  %2740 = vmatprep.subr.bf16.mxu1 %v3327_v0 }
 0x110   :  { %v123_v20 = vpop.f32.mrb[0].mxu0  ;;  %v184_v22 = vpop.f32.mrb[0].mxu1 }
 0x111   :  { %v124_v21 = vadd.f32 %v2453_v18, %v123_v20  ;;  %v2664_v23 = vpop.f32.mrb[1].mxu0  ;;  %v185_v24 = vadd.f32 %v2457_v19, %v184_v22  ;;  %v2670_v25 = vpop.f32.mrb[1].mxu1 }
 0x112   :  { %v126_v26 = vpop.f32.mrb[2].mxu0  ;;  %v187_v28 = vpop.f32.mrb[2].mxu1 }
 0x113   :  { %131 = vst.msk [vmem:[#allocation4] sm:$0xff] %vm130_vm3, %v124_v21  ;;  %v127_v27 = vadd.f32 %v2453_v18, %v126_v26  ;;  %v2665_v29 = vpop.f32.mrb[3].mxu0  ;;  %192 = vst.msk [vmem:[#allocation4 + $0x10] sm:$0xff] %vm130_vm3, %v185_v24  ;;  %v188_v30 = vadd.f32 %v2457_v19, %v187_v28  ;;  %v2671_v31 = vpop.f32.mrb[3].mxu1 }
 0x115   :  { %132 = vst.msk [vmem:[#allocation4 + $0x8] sm:$0xff] %vm130_vm3, %v127_v27  ;;  %193 = vst.msk [vmem:[#allocation4 + $0x18] sm:$0xff] %vm130_vm3, %v188_v30 }
 0x118   :  { %v245_v34 = vpop.f32.mrb[4].mxu0  ;;  %v306_v36 = vpop.f32.mrb[4].mxu1 }
 0x119   :  { %v246_v35 = vadd.f32 %v2461_v32, %v245_v34  ;;  %v2676_v37 = vpop.f32.mrb[5].mxu0  ;;  %v307_v38 = vadd.f32 %v2465_v33, %v306_v36  ;;  %v2682_v39 = vpop.f32.mrb[5].mxu1 }
 0x11a   :  { %v248_v40 = vpop.f32.mrb[6].mxu0  ;;  %v309_v42 = vpop.f32.mrb[6].mxu1  ;;  %v338_v46 = vld [vmem:[#allocation4] sm:$0x1]  ;;  %v401_v50 = vld [vmem:[#allocation4 + $0x10] sm:$0x1] }
 0x11b   :  { %253 = vst.msk [vmem:[#allocation4 + $0x20] sm:$0xff] %vm130_vm3, %v246_v35  ;;  %v249_v41 = vadd.f32 %v2461_v32, %v248_v40  ;;  %v2677_v43 = vpop.f32.mrb[7].mxu0  ;;  %314 = vst.msk [vmem:[#allocation4 + $0x30] sm:$0xff] %vm130_vm3, %v307_v38  ;;  %v310_v44 = vadd.f32 %v2465_v33, %v309_v42  ;;  %v2683_v45 = vpop.f32.mrb[7].mxu1 }
 0x11c   :  { %v339_v53 = vld [vmem:[#allocation4 + $0x8] sm:$0x1]  ;;  %v402_v60 = vld [vmem:[#allocation4 + $0x18] sm:$0x1]  ;;  %v336_v43 = vld [vmem:[#allocation3] sm:$0x3] }
 0x11d   :  { %254 = vst.msk [vmem:[#allocation4 + $0x28] sm:$0xff] %vm130_vm3, %v249_v41  ;;  %315 = vst.msk [vmem:[#allocation4 + $0x38] sm:$0xff] %vm130_vm3, %v310_v44 }
 0x120   :  { %v389_v47 = vpop.f32.mrb[8].mxu0  ;;  %v449_v51 = vpop.f32.mrb[8].mxu1 }
 0x121   :  { %v396_v48 = vrot.slane %v389_v47, 1  ;;  %v399_v49 = vadd.f32 %v389_v47, %v338_v46  ;;  %v2690_v52 = vpop.f32.mrb[9].mxu0  ;;  %v456_v54 = vrot.slane %v449_v51, 1  ;;  %v459_v55 = vadd.f32 %v449_v51, %v401_v50  ;;  %v2698_v56 = vpop.f32.mrb[9].mxu1 }
 0x122   :  { %v392_v57 = vpop.f32.mrb[10].mxu0  ;;  %v452_v61 = vpop.f32.mrb[10].mxu1  ;;  %v461_v5 = vld [vmem:[#allocation4 + $0x20] sm:$0x1]  ;;  %v521_v11 = vld [vmem:[#allocation4 + $0x30] sm:$0x1] }
 0x123   :  { %v400_v58 = vadd.f32 %v396_v48, %v339_v53  ;;  %v2480_v59 = vmul.f32 -1.442695, %v399_v49  ;;  %v2691_v62 = vpop.f32.mrb[11].mxu0  ;;  %v460_v63 = vadd.f32 %v456_v54, %v402_v60  ;;  %v2482_v1 = vmul.f32 -1.442695, %v459_v55  ;;  %v2699_v2 = vpop.f32.mrb[11].mxu1 }
 0x124   :  { %v462_v19 = vld [vmem:[#allocation4 + $0x28] sm:$0x1]  ;;  %v522_v26 = vld [vmem:[#allocation4 + $0x38] sm:$0x1]  ;;  %v620_v47 = vrot.slane %v336_v43, 1 }
 0x125   :  { %2962 = vpow2.f32 %v2480_v59  ;;  %v2481_v3 = vmul.f32 -1.442695, %v400_v58  ;;  %v2483_v4 = vmul.f32 -1.442695, %v460_v63 }
 0x126   :  { %2964 = vpow2.f32 %v2482_v1 }
 0x127   :  { %2966 = vpow2.f32 %v2481_v3 }
 0x128   :  { %2968 = vpow2.f32 %v2483_v4  ;;  %v509_v6 = vpop.f32.mrb[12].mxu0  ;;  %v569_v13 = vpop.f32.mrb[12].mxu1 }
 0x129   :  { %v516_v7 = vrot.slane %v509_v6, 1  ;;  %v2706_v18 = vpop.f32.mrb[13].mxu0  ;;  %v519_v20 = vadd.f32 %v509_v6, %v461_v5  ;;  %v576_v21 = vrot.slane %v569_v13, 1  ;;  %v579_v22 = vadd.f32 %v569_v13, %v521_v11  ;;  %v2714_v23 = vpop.f32.mrb[13].mxu1  ;;  %v638_v13 = vld [vmem:[#allocation4 + $0x1] sm:$0x1] }
 0x12a   :  { %v512_v24 = vpop.f32.mrb[14].mxu0  ;;  %v572_v27 = vpop.f32.mrb[14].mxu1 }
 0x12b   :  { %v520_v25 = vadd.f32 %v516_v7, %v462_v19  ;;  %v2707_v28 = vpop.f32.mrb[15].mxu0  ;;  %v580_v29 = vadd.f32 %v576_v21, %v522_v26  ;;  %v2484_v30 = vmul.f32 -1.442695, %v579_v22  ;;  %v2715_v31 = vpop.f32.mrb[15].mxu1  ;;  %2970 = vtanh.f32 %v519_v20  ;;  %v697_v19 = vld [vmem:[#allocation4 + $0x11] sm:$0x1] }
 0x12c   :  { %v639_v27 = vld [vmem:[#allocation4 + $0x9] sm:$0x1]  ;;  %v698_v28 = vld [vmem:[#allocation4 + $0x19] sm:$0x1] }
 0x12d   :  { %v2485_v32 = vmul.f32 -1.442695, %v580_v29  ;;  %2972 = vtanh.f32 %v520_v25 }
 0x12e   :  { %2974 = vpow2.f32 %v2484_v30 }
 0x12f   :  { %v2963_v33 = vpop.eup %2962  ;;  %2976 = vpow2.f32 %v2485_v32 }
 0x130   :  { %v2965_v34 = vpop.eup %2964  ;;  %v587_v35 = vadd.f32 1.0, %v2963_v33 }
 0x131   :  { %v2967_v36 = vpop.eup %2966  ;;  %v599_v37 = vadd.f32 1.0, %v2965_v34 }
 0x132   :  { %v2969_v38 = vpop.eup %2968  ;;  %v588_v39 = vadd.f32 1.0, %v2967_v36  ;;  %2978 = vrcp.f32 %v587_v35 }
 0x133   :  { %v600_v40 = vadd.f32 1.0, %v2969_v38  ;;  %2980 = vrcp.f32 %v599_v37 }
 0x134   :  { %2982 = vrcp.f32 %v588_v39 }
 0x135   :  { %2984 = vrcp.f32 %v600_v40  ;;  %v2971_v41 = vpop.eup %2970  ;;  %v793_v40 = vld [vmem:[#allocation4 + $0x31] sm:$0x1] }
 0x137   :  { %v2973_v42 = vpop.eup %2972 }
 0x138   :  { %v2975_v44 = vpop.eup %2974 }
 0x139   :  { %v2977_v45 = vpop.eup %2976  ;;  %v613_v50 = vadd.f32 1.0, %v2975_v44 }
 0x13a   :  { %v614_v55 = vadd.f32 1.0, %v2977_v45 }
 0x13b   :  { %2986 = vrcp.f32 %v613_v50  ;;  %v794_v50 = vld [vmem:[#allocation4 + $0x39] sm:$0x1] }
 0x13c   :  { %v2979_v46 = vpop.eup %2978 }
 0x13d   :  { %v2981_v48 = vpop.eup %2980  ;;  %v625_v49 = vmul.f32 %v2979_v46, %v2971_v41 }
 0x13e   :  { %v2983_v51 = vpop.eup %2982  ;;  %v623_v52 = vmul.f32 %v2981_v48, %v336_v43  ;;  %v746_v48 = vld [vmem:[#allocation4 + $0x29] sm:$0x1] }
 0x13f   :  { %v2985_v53 = vpop.eup %2984  ;;  %v626_v54 = vmul.f32 %v2983_v51, %v2973_v42  ;;  %v745_v42 = vld [vmem:[#allocation4 + $0x21] sm:$0x1] }
 0x140   :  { %v624_v56 = vmul.f32 %v2985_v53, %v620_v47  ;;  %v3495_v57 = vadd.f32 %v625_v49, %v623_v52 }
 0x142   :  { %v3497_v58 = vadd.f32 %v626_v54, %v624_v56  ;;  %2988 = vtanh.f32 %v3495_v57 }
 0x143   :  { %2990 = vrcp.f32 %v614_v55 }
 0x144   :  { %2992 = vtanh.f32 %v3497_v58 }
 0x145   :  { %v2987_v59 = vpop.eup %2986 }
 0x14c   :  { %v2989_v60 = vpop.eup %2988 }
 0x14d   :  { %v2991_v61 = vpop.eup %2990  ;;  %v631_v62 = vmul.f32 %v2989_v60, %v2987_v59 }
 0x14e   :  { %v2993_v63 = vpop.eup %2992 }
 0x14f   :  { %v632_v1 = vmul.f32 %v2993_v63, %v2991_v61  ;;  %634 = vst.msk [vmem:[#allocation5] sm:$0x1] %vm633_vm4, %v631_v62  ;;  %v636_v2 = vpack.c.bf16 %v631_v62, %v631_v62 }
 0x151   :  { %635 = vst.msk [vmem:[#allocation5 + $0x8] sm:$0x1] %vm633_vm4, %v632_v1  ;;  %v637_v3 = vpack.c.bf16 %v632_v1, %v632_v1  ;;  %v642_v5 = vunpack.c.l.b16 %v636_v2 }
 0x153   :  { %v643_v4 = vunpack.c.l.b16 %v637_v3 }
 0x155   :  { %v644_v6 = vrot.slane %v643_v4, 7 }
 0x157   :  { %v646_v7 = vsel %vm645_vm5, %v644_v6, %v642_v5 }
 0x158   :  { %v647_v11 = vpack.c.b16 %v646_v7, %v646_v7 }
 0x15a   :  { %2721 = vmatmul.mubr.msk.bf16.vlgmr.msra.gmra.mrb[16].mxu0 %vm130_vm3, %v647_v11  ;;  %2729 = vmatmul.mubr.msk.bf16.vlgmr.msra.gmra.mrb[16].mxu1 %vm130_vm3, %v647_v11 }
 0x15b   :  { %2733 = vmatpush3.bf16.msra.mxu0 %v3436_v14  ;;  %2741 = vmatpush3.bf16.msra.mxu1 %v3440_v15 }
 0x15c   :  { %2734 = vmatprep.subr.bf16.mxu0 %v3327_v0  ;;  %2742 = vmatprep.subr.bf16.mxu1 %v3327_v0 }
 0x15d   :  { %2736 = vmatprep.mubr.msk.bf16.mxu0 %vm3328_vm1, %v3327_v0  ;;  %2744 = vmatprep.mubr.msk.bf16.mxu1 %vm3328_vm1, %v3327_v0 }
 0x15f   :  { %2735 = vmatpush3.bf16.msra.mxu0 %v3446_v16  ;;  %2743 = vmatpush3.bf16.msra.mxu1 %v3450_v17 }
 0x160   :  { %2748 = vmatprep.subr.bf16.mxu0 %v3327_v0  ;;  %2756 = vmatprep.subr.bf16.mxu1 %v3327_v0 }
 0x162   :  { %2737 = vmatmul.mubr.msk.bf16.vlgmr.msra.gmra.mrb[20].mxu0 %vm130_vm3, %v647_v11  ;;  %2745 = vmatmul.mubr.msk.bf16.vlgmr.msra.gmra.mrb[20].mxu1 %vm130_vm3, %v647_v11 }
 0x163   :  { %2749 = vmatpush3.bf16.msra.mxu0 %v3417_v8  ;;  %2757 = vmatpush3.bf16.msra.mxu1 %v3419_v9 }
 0x164   :  { %2750 = vmatprep.subr.bf16.mxu0 %v3327_v0  ;;  %2758 = vmatprep.subr.bf16.mxu1 %v3327_v0 }
 0x165   :  { %2752 = vmatprep.mubr.msk.bf16.mxu0 %vm3328_vm1, %v3327_v0  ;;  %2760 = vmatprep.mubr.msk.bf16.mxu1 %vm3328_vm1, %v3327_v0 }
 0x167   :  { %2751 = vmatpush3.bf16.msra.mxu0 %v3424_v10  ;;  %2759 = vmatpush3.bf16.msra.mxu1 %v3428_v12 }
 0x168   :  { %2764 = vmatprep.subr.bf16.mxu0 %v3327_v0  ;;  %2772 = vmatprep.subr.bf16.mxu1 %v3327_v0 }
 0x22d   :  { %v685_v18 = vpop.f32.mrb[16].mxu0  ;;  %v733_v20 = vpop.f32.mrb[16].mxu1 }
 0x22e   :  { %v692_v21 = vrot.slane %v685_v18, 1  ;;  %v695_v22 = vadd.f32 %v685_v18, %v638_v13  ;;  %v740_v23 = vrot.slane %v733_v20, 1  ;;  %v743_v24 = vadd.f32 %v733_v20, %v697_v19  ;;  %v2722_v25 = vpop.f32.mrb[17].mxu0  ;;  %v2730_v26 = vpop.f32.mrb[17].mxu1 }
 0x22f   :  { %v688_v29 = vpop.f32.mrb[18].mxu0  ;;  %v736_v30 = vpop.f32.mrb[18].mxu1 }
 0x230   :  { %v696_v31 = vadd.f32 %v692_v21, %v639_v27  ;;  %v2490_v32 = vmul.f32 -1.442695, %v695_v22  ;;  %v744_v33 = vadd.f32 %v740_v23, %v698_v28  ;;  %v2492_v34 = vmul.f32 -1.442695, %v743_v24  ;;  %v2723_v35 = vpop.f32.mrb[19].mxu0  ;;  %v2731_v36 = vpop.f32.mrb[19].mxu1 }
 0x232   :  { %2994 = vpow2.f32 %v2490_v32  ;;  %v2491_v37 = vmul.f32 -1.442695, %v696_v31  ;;  %v2493_v38 = vmul.f32 -1.442695, %v744_v33 }
 0x233   :  { %2996 = vpow2.f32 %v2492_v34 }
 0x234   :  { %2998 = vpow2.f32 %v2491_v37 }
 0x235   :  { %3000 = vpow2.f32 %v2493_v38  ;;  %v781_v39 = vpop.f32.mrb[20].mxu0  ;;  %v829_v41 = vpop.f32.mrb[20].mxu1 }
 0x236   :  { %v788_v43 = vrot.slane %v781_v39, 1  ;;  %v836_v44 = vrot.slane %v829_v41, 1  ;;  %v839_v45 = vadd.f32 %v829_v41, %v793_v40  ;;  %v2738_v46 = vpop.f32.mrb[21].mxu0  ;;  %v2746_v47 = vpop.f32.mrb[21].mxu1  ;;  %v791_v49 = vadd.f32 %v781_v39, %v745_v42  ;;  %v893_v41 = vld [vmem:[#allocation4 + $0x2] sm:$0x1] }
 0x237   :  { %v784_v51 = vpop.f32.mrb[22].mxu0  ;;  %v832_v52 = vpop.f32.mrb[22].mxu1 }
 0x238   :  { %v792_v53 = vadd.f32 %v788_v43, %v746_v48  ;;  %v840_v54 = vadd.f32 %v836_v44, %v794_v50  ;;  %v2739_v55 = vpop.f32.mrb[23].mxu0  ;;  %v2747_v56 = vpop.f32.mrb[23].mxu1  ;;  %v2494_v59 = vmul.f32 -1.442695, %v839_v45  ;;  %3002 = vtanh.f32 %v791_v49  ;;  %v951_v43 = vld [vmem:[#allocation4 + $0x12] sm:$0x1] }
 0x239   :  { %v894_v51 = vld [vmem:[#allocation4 + $0xa] sm:$0x1]  ;;  %v952_v52 = vld [vmem:[#allocation4 + $0x1a] sm:$0x1] }
 0x23a   :  { %v2495_v60 = vmul.f32 -1.442695, %v840_v54  ;;  %3004 = vtanh.f32 %v792_v53 }
 0x23b   :  { %3006 = vpow2.f32 %v2494_v59 }
 0x23c   :  { %v2995_v61 = vpop.eup %2994  ;;  %3008 = vpow2.f32 %v2495_v60 }
 0x23d   :  { %v2997_v62 = vpop.eup %2996  ;;  %v847_v63 = vadd.f32 1.0, %v2995_v61 }
 0x23e   :  { %v2999_v1 = vpop.eup %2998  ;;  %v859_v2 = vadd.f32 1.0, %v2997_v62 }
 0x23f   :  { %v3001_v3 = vpop.eup %3000  ;;  %v848_v4 = vadd.f32 1.0, %v2999_v1  ;;  %3010 = vrcp.f32 %v847_v63 }
 0x240   :  { %v860_v5 = vadd.f32 1.0, %v3001_v3  ;;  %3012 = vrcp.f32 %v859_v2  ;;  %v1047_v3 = vld [vmem:[#allocation4 + $0x32] sm:$0x1] }
 0x241   :  { %3014 = vrcp.f32 %v848_v4 }
 0x242   :  { %3016 = vrcp.f32 %v860_v5  ;;  %v3003_v6 = vpop.eup %3002  ;;  %v999_v5 = vld [vmem:[#allocation4 + $0x22] sm:$0x1] }
 0x244   :  { %v3005_v7 = vpop.eup %3004 }
 0x245   :  { %v3007_v11 = vpop.eup %3006 }
 0x246   :  { %v3009_v13 = vpop.eup %3008  ;;  %v873_v21 = vadd.f32 1.0, %v3007_v11 }
 0x247   :  { %v874_v26 = vadd.f32 1.0, %v3009_v13 }
 0x248   :  { %3018 = vrcp.f32 %v873_v21  ;;  %v1048_v21 = vld [vmem:[#allocation4 + $0x3a] sm:$0x1] }
 0x249   :  { %v3011_v18 = vpop.eup %3010 }
 0x24a   :  { %v3013_v19 = vpop.eup %3012  ;;  %v881_v20 = vmul.f32 %v3011_v18, %v3003_v6 }
 0x24b   :  { %v3015_v22 = vpop.eup %3014  ;;  %v879_v23 = vmul.f32 %v3013_v19, %v3495_v57  ;;  %v1000_v19 = vld [vmem:[#allocation4 + $0x2a] sm:$0x1] }
 0x24c   :  { %v3017_v24 = vpop.eup %3016  ;;  %v882_v25 = vmul.f32 %v3015_v22, %v3005_v7 }
 0x24d   :  { %v880_v27 = vmul.f32 %v3017_v24, %v3497_v58  ;;  %v3534_v28 = vadd.f32 %v881_v20, %v879_v23 }
 0x24f   :  { %v3536_v29 = vadd.f32 %v882_v25, %v880_v27  ;;  %3020 = vtanh.f32 %v3534_v28 }
 0x250   :  { %3022 = vrcp.f32 %v874_v26 }
 0x251   :  { %3024 = vtanh.f32 %v3536_v29 }
 0x252   :  { %v3019_v30 = vpop.eup %3018 }
 0x259   :  { %v3021_v31 = vpop.eup %3020 }
 0x25a   :  { %v3023_v32 = vpop.eup %3022  ;;  %v887_v33 = vmul.f32 %v3021_v31, %v3019_v30 }
 0x25b   :  { %v3025_v57 = vpop.eup %3024 }
 0x25c   :  { %v888_v34 = vmul.f32 %v3025_v57, %v3023_v32  ;;  %889 = vst.msk [vmem:[#allocation5 + $0x1] sm:$0x1] %vm633_vm4, %v887_v33  ;;  %v891_v58 = vpack.c.bf16 %v887_v33, %v887_v33 }
 0x25e   :  { %890 = vst.msk [vmem:[#allocation5 + $0x9] sm:$0x1] %vm633_vm4, %v888_v34  ;;  %v892_v35 = vpack.c.bf16 %v888_v34, %v888_v34  ;;  %v897_v37 = vunpack.c.l.b16 %v891_v58 }
 0x260   :  { %v898_v36 = vunpack.c.l.b16 %v892_v35 }
 0x262   :  { %v899_v38 = vrot.slane %v898_v36, 7 }
 0x264   :  { %v900_v39 = vsel %vm645_vm5, %v899_v38, %v897_v37 }
 0x265   :  { %v901_v40 = vpack.c.b16 %v900_v39, %v900_v39 }
 0x267   :  { %2753 = vmatmul.mubr.msk.bf16.vlgmr.msra.gmra.mrb[24].mxu0 %vm130_vm3, %v901_v40  ;;  %2761 = vmatmul.mubr.msk.bf16.vlgmr.msra.gmra.mrb[24].mxu1 %vm130_vm3, %v901_v40 }
 0x268   :  { %2765 = vmatpush3.bf16.msra.mxu0 %v3436_v14  ;;  %2773 = vmatpush3.bf16.msra.mxu1 %v3440_v15 }
 0x269   :  { %2766 = vmatprep.subr.bf16.mxu0 %v3327_v0  ;;  %2774 = vmatprep.subr.bf16.mxu1 %v3327_v0 }
 0x26a   :  { %2768 = vmatprep.mubr.msk.bf16.mxu0 %vm3328_vm1, %v3327_v0  ;;  %2776 = vmatprep.mubr.msk.bf16.mxu1 %vm3328_vm1, %v3327_v0 }
 0x26c   :  { %2767 = vmatpush3.bf16.msra.mxu0 %v3446_v16  ;;  %2775 = vmatpush3.bf16.msra.mxu1 %v3450_v17 }
 0x26d   :  { %2780 = vmatprep.subr.bf16.mxu0 %v3327_v0  ;;  %2788 = vmatprep.subr.bf16.mxu1 %v3327_v0 }
 0x26f   :  { %2769 = vmatmul.mubr.msk.bf16.vlgmr.msra.gmra.mrb[28].mxu0 %vm130_vm3, %v901_v40  ;;  %2777 = vmatmul.mubr.msk.bf16.vlgmr.msra.gmra.mrb[28].mxu1 %vm130_vm3, %v901_v40 }
 0x270   :  { %2781 = vmatpush3.bf16.msra.mxu0 %v3417_v8  ;;  %2789 = vmatpush3.bf16.msra.mxu1 %v3419_v9 }
 0x271   :  { %2782 = vmatprep.subr.bf16.mxu0 %v3327_v0  ;;  %2790 = vmatprep.subr.bf16.mxu1 %v3327_v0 }
 0x272   :  { %2784 = vmatprep.mubr.msk.bf16.mxu0 %vm3328_vm1, %v3327_v0  ;;  %2792 = vmatprep.mubr.msk.bf16.mxu1 %vm3328_vm1, %v3327_v0 }
 0x274   :  { %2783 = vmatpush3.bf16.msra.mxu0 %v3424_v10  ;;  %2791 = vmatpush3.bf16.msra.mxu1 %v3428_v12 }
 0x275   :  { %2796 = vmatprep.subr.bf16.mxu0 %v3327_v0  ;;  %2804 = vmatprep.subr.bf16.mxu1 %v3327_v0 }
 0x33a   :  { %v939_v42 = vpop.f32.mrb[24].mxu0  ;;  %v987_v44 = vpop.f32.mrb[24].mxu1 }
 0x33b   :  { %v946_v45 = vrot.slane %v939_v42, 1  ;;  %v949_v46 = vadd.f32 %v939_v42, %v893_v41  ;;  %v994_v47 = vrot.slane %v987_v44, 1  ;;  %v997_v48 = vadd.f32 %v987_v44, %v951_v43  ;;  %v2754_v49 = vpop.f32.mrb[25].mxu0  ;;  %v2762_v50 = vpop.f32.mrb[25].mxu1 }
 0x33c   :  { %v942_v53 = vpop.f32.mrb[26].mxu0  ;;  %v990_v54 = vpop.f32.mrb[26].mxu1 }
 0x33d   :  { %v950_v55 = vadd.f32 %v946_v45, %v894_v51  ;;  %v2500_v56 = vmul.f32 -1.442695, %v949_v46  ;;  %v998_v59 = vadd.f32 %v994_v47, %v952_v52  ;;  %v2502_v60 = vmul.f32 -1.442695, %v997_v48  ;;  %v2755_v61 = vpop.f32.mrb[27].mxu0  ;;  %v2763_v62 = vpop.f32.mrb[27].mxu1 }
 0x33f   :  { %3026 = vpow2.f32 %v2500_v56  ;;  %v2501_v63 = vmul.f32 -1.442695, %v950_v55  ;;  %v2503_v1 = vmul.f32 -1.442695, %v998_v59 }
 0x340   :  { %3028 = vpow2.f32 %v2502_v60 }
 0x341   :  { %3030 = vpow2.f32 %v2501_v63 }
 0x342   :  { %3032 = vpow2.f32 %v2503_v1  ;;  %v1035_v2 = vpop.f32.mrb[28].mxu0  ;;  %v1083_v4 = vpop.f32.mrb[28].mxu1 }
 0x343   :  { %v1042_v6 = vrot.slane %v1035_v2, 1  ;;  %v1090_v7 = vrot.slane %v1083_v4, 1  ;;  %v1093_v11 = vadd.f32 %v1083_v4, %v1047_v3  ;;  %v2770_v13 = vpop.f32.mrb[29].mxu0  ;;  %v2778_v18 = vpop.f32.mrb[29].mxu1  ;;  %v1045_v20 = vadd.f32 %v1035_v2, %v999_v5 }
 0x344   :  { %v1038_v22 = vpop.f32.mrb[30].mxu0  ;;  %v1086_v23 = vpop.f32.mrb[30].mxu1  ;;  %v1206_v13 = vld [vmem:[#allocation4 + $0x1b] sm:$0x1] }
 0x345   :  { %v1046_v24 = vadd.f32 %v1042_v6, %v1000_v19  ;;  %v1094_v25 = vadd.f32 %v1090_v7, %v1048_v21  ;;  %v2771_v26 = vpop.f32.mrb[31].mxu0  ;;  %v2779_v27 = vpop.f32.mrb[31].mxu1  ;;  %v2504_v30 = vmul.f32 -1.442695, %v1093_v11  ;;  %3034 = vtanh.f32 %v1045_v20  ;;  %v1148_v11 = vld [vmem:[#allocation4 + $0xb] sm:$0x1] }
 0x346   :  { %v1301_v27 = vld [vmem:[#allocation4 + $0x33] sm:$0x1] }
 0x347   :  { %v2505_v31 = vmul.f32 -1.442695, %v1094_v25  ;;  %3036 = vtanh.f32 %v1046_v24 }
 0x348   :  { %3038 = vpow2.f32 %v2504_v30 }
 0x349   :  { %v3027_v32 = vpop.eup %3026  ;;  %3040 = vpow2.f32 %v2505_v31  ;;  %v1253_v31 = vld [vmem:[#allocation4 + $0x23] sm:$0x1] }
 0x34a   :  { %v3029_v33 = vpop.eup %3028  ;;  %v1101_v57 = vadd.f32 1.0, %v3027_v32 }
 0x34b   :  { %v3031_v34 = vpop.eup %3030  ;;  %v1113_v58 = vadd.f32 1.0, %v3029_v33 }
 0x34c   :  { %v3033_v35 = vpop.eup %3032  ;;  %v1102_v36 = vadd.f32 1.0, %v3031_v34  ;;  %3042 = vrcp.f32 %v1101_v57 }
 0x34d   :  { %v1114_v37 = vadd.f32 1.0, %v3033_v35  ;;  %3044 = vrcp.f32 %v1113_v58  ;;  %v1254_v35 = vld [vmem:[#allocation4 + $0x2b] sm:$0x1] }
 0x34e   :  { %3046 = vrcp.f32 %v1102_v36 }
 0x34f   :  { %3048 = vrcp.f32 %v1114_v37  ;;  %v3035_v38 = vpop.eup %3034  ;;  %v1302_v37 = vld [vmem:[#allocation4 + $0x3b] sm:$0x1] }
 0x351   :  { %v3037_v39 = vpop.eup %3036 }
 0x352   :  { %v3039_v40 = vpop.eup %3038 }
 0x353   :  { %v3041_v41 = vpop.eup %3040  ;;  %v1127_v45 = vadd.f32 1.0, %v3039_v40 }
 0x354   :  { %v1128_v50 = vadd.f32 1.0, %v3041_v41 }
 0x355   :  { %3050 = vrcp.f32 %v1127_v45 }
 0x356   :  { %v3043_v42 = vpop.eup %3042 }
 0x357   :  { %v3045_v43 = vpop.eup %3044  ;;  %v1135_v44 = vmul.f32 %v3043_v42, %v3035_v38 }
 0x358   :  { %v3047_v46 = vpop.eup %3046  ;;  %v1133_v47 = vmul.f32 %v3045_v43, %v3534_v28 }
 0x359   :  { %v3049_v48 = vpop.eup %3048  ;;  %v1136_v49 = vmul.f32 %v3047_v46, %v3037_v39 }
 0x35a   :  { %v1134_v51 = vmul.f32 %v3049_v48, %v3536_v29  ;;  %v3573_v52 = vadd.f32 %v1135_v44, %v1133_v47 }
 0x35c   :  { %v3575_v53 = vadd.f32 %v1136_v49, %v1134_v51  ;;  %3052 = vtanh.f32 %v3573_v52 }
 0x35d   :  { %3054 = vrcp.f32 %v1128_v50 }
 0x35e   :  { %3056 = vtanh.f32 %v3575_v53 }
 0x35f   :  { %v3051_v54 = vpop.eup %3050 }
 0x366   :  { %v3053_v55 = vpop.eup %3052 }
 0x367   :  { %v3055_v56 = vpop.eup %3054  ;;  %v1141_v59 = vmul.f32 %v3053_v55, %v3051_v54 }
 0x368   :  { %v3057_v28 = vpop.eup %3056 }
 0x369   :  { %v1142_v60 = vmul.f32 %v3057_v28, %v3055_v56  ;;  %1143 = vst.msk [vmem:[#allocation5 + $0x2] sm:$0x1] %vm633_vm4, %v1141_v59  ;;  %v1145_v29 = vpack.c.bf16 %v1141_v59, %v1141_v59 }
 0x36b   :  { %1144 = vst.msk [vmem:[#allocation5 + $0xa] sm:$0x1] %vm633_vm4, %v1142_v60  ;;  %v1146_v61 = vpack.c.bf16 %v1142_v60, %v1142_v60  ;;  %v1151_v63 = vunpack.c.l.b16 %v1145_v29 }
 0x36d   :  { %v1152_v62 = vunpack.c.l.b16 %v1146_v61 }
 0x36f   :  { %v1153_v1 = vrot.slane %v1152_v62, 7 }
 0x371   :  { %v1154_v2 = vsel %vm645_vm5, %v1153_v1, %v1151_v63 }
 0x372   :  { %v1155_v3 = vpack.c.b16 %v1154_v2, %v1154_v2 }
 0x374   :  { %2785 = vmatmul.mubr.msk.bf16.vlgmr.msra.gmra.mrb[32].mxu0 %vm130_vm3, %v1155_v3  ;;  %2793 = vmatmul.mubr.msk.bf16.vlgmr.msra.gmra.mrb[32].mxu1 %vm130_vm3, %v1155_v3 }
 0x375   :  { %2797 = vmatpush3.bf16.msra.mxu0 %v3436_v14  ;;  %2805 = vmatpush3.bf16.msra.mxu1 %v3440_v15  ;;  %v1205_v14 = vld [vmem:[#allocation4 + $0x13] sm:$0x1] }
 0x376   :  { %2798 = vmatprep.subr.bf16.mxu0 %v3327_v0  ;;  %2806 = vmatprep.subr.bf16.mxu1 %v3327_v0 }
 0x377   :  { %2800 = vmatprep.mubr.msk.bf16.mxu0 %vm3328_vm1, %v3327_v0  ;;  %2808 = vmatprep.mubr.msk.bf16.mxu1 %vm3328_vm1, %v3327_v0 }
 0x379   :  { %2799 = vmatpush3.bf16.msra.mxu0 %v3446_v16  ;;  %2807 = vmatpush3.bf16.msra.mxu1 %v3450_v17 }
 0x37a   :  { %2812 = vmatprep.subr.bf16.mxu0 %v3327_v0  ;;  %2820 = vmatprep.subr.bf16.mxu1 %v3327_v0 }
 0x37c   :  { %2801 = vmatmul.mubr.msk.bf16.vlgmr.msra.gmra.mrb[36].mxu0 %vm130_vm3, %v1155_v3  ;;  %2809 = vmatmul.mubr.msk.bf16.vlgmr.msra.gmra.mrb[36].mxu1 %vm130_vm3, %v1155_v3 }
 0x37d   :  { %2813 = vmatpush3.bf16.msra.mxu0 %v3417_v8  ;;  %2821 = vmatpush3.bf16.msra.mxu1 %v3419_v9  ;;  %v1147_v8 = vld [vmem:[#allocation4 + $0x3] sm:$0x1] }
 0x37e   :  { %2814 = vmatprep.subr.bf16.mxu0 %v3327_v0  ;;  %2822 = vmatprep.subr.bf16.mxu1 %v3327_v0 }
 0x37f   :  { %2816 = vmatprep.mubr.msk.bf16.mxu0 %vm3328_vm1, %v3327_v0  ;;  %2824 = vmatprep.mubr.msk.bf16.mxu1 %vm3328_vm1, %v3327_v0 }
 0x381   :  { %2815 = vmatpush3.bf16.msra.mxu0 %v3424_v10  ;;  %2823 = vmatpush3.bf16.msra.mxu1 %v3428_v12 }
 0x382   :  { %2828 = vmatprep.subr.bf16.mxu0 %v3327_v0  ;;  %2836 = vmatprep.subr.bf16.mxu1 %v3327_v0 }
 0x447   :  { %v1193_v9 = vpop.f32.mrb[32].mxu0  ;;  %v1241_v15 = vpop.f32.mrb[32].mxu1 }
 0x448   :  { %v1200_v16 = vrot.slane %v1193_v9, 1  ;;  %v1203_v17 = vadd.f32 %v1193_v9, %v1147_v8  ;;  %v1248_v4 = vrot.slane %v1241_v15, 1  ;;  %v1251_v5 = vadd.f32 %v1241_v15, %v1205_v14  ;;  %v2786_v6 = vpop.f32.mrb[33].mxu0  ;;  %v2794_v7 = vpop.f32.mrb[33].mxu1 }
 0x449   :  { %v1196_v18 = vpop.f32.mrb[34].mxu0  ;;  %v1244_v10 = vpop.f32.mrb[34].mxu1 }
 0x44a   :  { %v1204_v19 = vadd.f32 %v1200_v16, %v1148_v11  ;;  %v2510_v12 = vmul.f32 -1.442695, %v1203_v17  ;;  %v1252_v20 = vadd.f32 %v1248_v4, %v1206_v13  ;;  %v2512_v21 = vmul.f32 -1.442695, %v1251_v5  ;;  %v2787_v22 = vpop.f32.mrb[35].mxu0  ;;  %v2795_v23 = vpop.f32.mrb[35].mxu1 }
 0x44b   :  { %v3635_v22 = vld [vmem:[#allocation11 + $0x28] sm:$0xff]   ;;  %v3638_v23 = vld [vmem:[#allocation11 + $0x38] sm:$0xff]  }
 0x44c   :  { %3058 = vpow2.f32 %v2510_v12  ;;  %v2511_v24 = vmul.f32 -1.442695, %v1204_v19  ;;  %v2513_v25 = vmul.f32 -1.442695, %v1252_v20  ;;  %v3623_v20 = vld [vmem:[#allocation11 + $0x20] sm:$0xff]  }
 0x44d   :  { %3060 = vpow2.f32 %v2512_v21  ;;  %v3626_v21 = vld [vmem:[#allocation11 + $0x30] sm:$0xff]  }
 0x44e   :  { %3062 = vpow2.f32 %v2511_v24  ;;  %v3645_v24 = vld [vmem:[#allocation11] sm:$0xff]  }
 0x44f   :  { %3064 = vpow2.f32 %v2513_v25  ;;  %v1289_v26 = vpop.f32.mrb[36].mxu0  ;;  %v1337_v30 = vpop.f32.mrb[36].mxu1  ;;  %v3648_v25 = vld [vmem:[#allocation11 + $0x10] sm:$0xff]  }
 0x450   :  { %v1296_v32 = vrot.slane %v1289_v26, 1  ;;  %v1344_v33 = vrot.slane %v1337_v30, 1  ;;  %v1347_v57 = vadd.f32 %v1337_v30, %v1301_v27  ;;  %v2802_v34 = vpop.f32.mrb[37].mxu0  ;;  %v2810_v58 = vpop.f32.mrb[37].mxu1  ;;  %v1299_v36 = vadd.f32 %v1289_v26, %v1253_v31  ;;  %v3657_v26 = vld [vmem:[#allocation11 + $0x8] sm:$0xff]   ;;  %v3660_v27 = vld [vmem:[#allocation11 + $0x18] sm:$0xff]  }
 0x451   :  { %v1292_v38 = vpop.f32.mrb[38].mxu0  ;;  %v1340_v39 = vpop.f32.mrb[38].mxu1  ;;  %v1401_v30 = vld [vmem:[#allocation4 + $0x4] sm:$0x1] }
 0x452   :  { %v1300_v40 = vadd.f32 %v1296_v32, %v1254_v35  ;;  %v1348_v41 = vadd.f32 %v1344_v33, %v1302_v37  ;;  %v2803_v42 = vpop.f32.mrb[39].mxu0  ;;  %v2811_v43 = vpop.f32.mrb[39].mxu1  ;;  %v2514_v44 = vmul.f32 -1.442695, %v1347_v57  ;;  %3066 = vtanh.f32 %v1299_v36  ;;  %v1459_v32 = vld [vmem:[#allocation4 + $0x14] sm:$0x1] }
 0x453   :  { %v1402_v38 = vld [vmem:[#allocation4 + $0xc] sm:$0x1]  ;;  %v1460_v39 = vld [vmem:[#allocation4 + $0x1c] sm:$0x1] }
 0x454   :  { %v2515_v45 = vmul.f32 -1.442695, %v1348_v41  ;;  %3068 = vtanh.f32 %v1300_v40 }
 0x455   :  { %3070 = vpow2.f32 %v2514_v44 }
 0x456   :  { %v3059_v46 = vpop.eup %3058  ;;  %3072 = vpow2.f32 %v2515_v45 }
 0x457   :  { %v3061_v47 = vpop.eup %3060  ;;  %v1355_v48 = vadd.f32 1.0, %v3059_v46 }
 0x458   :  { %v3063_v49 = vpop.eup %3062  ;;  %v1367_v50 = vadd.f32 1.0, %v3061_v47 }
 0x459   :  { %v3065_v51 = vpop.eup %3064  ;;  %v1356_v54 = vadd.f32 1.0, %v3063_v49  ;;  %3074 = vrcp.f32 %v1355_v48 }
 0x45a   :  { %v1368_v55 = vadd.f32 1.0, %v3065_v51  ;;  %3076 = vrcp.f32 %v1367_v50  ;;  %v1555_v51 = vld [vmem:[#allocation4 + $0x34] sm:$0x1] }
 0x45b   :  { %3078 = vrcp.f32 %v1356_v54 }
 0x45c   :  { %3080 = vrcp.f32 %v1368_v55  ;;  %v3067_v56 = vpop.eup %3066  ;;  %v1507_v55 = vld [vmem:[#allocation4 + $0x24] sm:$0x1] }
 0x45e   :  { %v3069_v59 = vpop.eup %3068 }
 0x45f   :  { %v3071_v28 = vpop.eup %3070 }
 0x460   :  { %v3073_v60 = vpop.eup %3072  ;;  %v1381_v63 = vadd.f32 1.0, %v3071_v28 }
 0x461   :  { %v1382_v9 = vadd.f32 1.0, %v3073_v60 }
 0x462   :  { %3082 = vrcp.f32 %v1381_v63  ;;  %v1556_v63 = vld [vmem:[#allocation4 + $0x3c] sm:$0x1] }
 0x463   :  { %v3075_v29 = vpop.eup %3074 }
 0x464   :  { %v3077_v61 = vpop.eup %3076  ;;  %v1389_v62 = vmul.f32 %v3075_v29, %v3067_v56 }
 0x465   :  { %v3079_v1 = vpop.eup %3078  ;;  %v1387_v2 = vmul.f32 %v3077_v61, %v3573_v52  ;;  %v1508_v61 = vld [vmem:[#allocation4 + $0x2c] sm:$0x1] }
 0x466   :  { %v3081_v3 = vpop.eup %3080  ;;  %v1390_v8 = vmul.f32 %v3079_v1, %v3069_v59 }
 0x467   :  { %v1388_v14 = vmul.f32 %v3081_v3, %v3575_v53  ;;  %v3612_v15 = vadd.f32 %v1389_v62, %v1387_v2 }
 0x469   :  { %v3614_v16 = vadd.f32 %v1390_v8, %v1388_v14  ;;  %3084 = vtanh.f32 %v3612_v15 }
 0x46a   :  { %3086 = vrcp.f32 %v1382_v9 }
 0x46b   :  { %3088 = vtanh.f32 %v3614_v16 }
 0x46c   :  { %v3083_v17 = vpop.eup %3082 }
 0x473   :  { %v3085_v4 = vpop.eup %3084 }
 0x474   :  { %v3087_v5 = vpop.eup %3086  ;;  %v1395_v6 = vmul.f32 %v3085_v4, %v3083_v17 }
 0x475   :  { %v3089_v52 = vpop.eup %3088 }
 0x476   :  { %v1396_v7 = vmul.f32 %v3089_v52, %v3087_v5  ;;  %1397 = vst.msk [vmem:[#allocation5 + $0x3] sm:$0x1] %vm633_vm4, %v1395_v6  ;;  %v1399_v53 = vpack.c.bf16 %v1395_v6, %v1395_v6 }
 0x478   :  { %1398 = vst.msk [vmem:[#allocation5 + $0xb] sm:$0x1] %vm633_vm4, %v1396_v7  ;;  %v1400_v11 = vpack.c.bf16 %v1396_v7, %v1396_v7  ;;  %v1405_v18 = vunpack.c.l.b16 %v1399_v53 }
 0x47a   :  { %v1406_v13 = vunpack.c.l.b16 %v1400_v11 }
 0x47c   :  { %v1407_v10 = vrot.slane %v1406_v13, 7 }
 0x47e   :  { %v1408_v19 = vsel %vm645_vm5, %v1407_v10, %v1405_v18 }
 0x47f   :  { %v1409_v12 = vpack.c.b16 %v1408_v19, %v1408_v19 }
 0x481   :  { %2817 = vmatmul.mubr.msk.bf16.vlgmr.msra.gmra.mrb[40].mxu0 %vm130_vm3, %v1409_v12  ;;  %2825 = vmatmul.mubr.msk.bf16.vlgmr.msra.gmra.mrb[40].mxu1 %vm130_vm3, %v1409_v12 }
 0x482   :  { %2829 = vmatpush3.bf16.msra.mxu0 %v3623_v20  ;;  %2837 = vmatpush3.bf16.msra.mxu1 %v3626_v21 }
 0x483   :  { %2830 = vmatprep.subr.bf16.mxu0 %v3327_v0  ;;  %2838 = vmatprep.subr.bf16.mxu1 %v3327_v0 }
 0x484   :  { %2832 = vmatprep.mubr.msk.bf16.mxu0 %vm3328_vm1, %v3327_v0  ;;  %2840 = vmatprep.mubr.msk.bf16.mxu1 %vm3328_vm1, %v3327_v0 }
 0x486   :  { %2831 = vmatpush3.bf16.msra.mxu0 %v3635_v22  ;;  %2839 = vmatpush3.bf16.msra.mxu1 %v3638_v23 }
 0x487   :  { %2844 = vmatprep.subr.bf16.mxu0 %v3327_v0  ;;  %2852 = vmatprep.subr.bf16.mxu1 %v3327_v0 }
 0x489   :  { %2833 = vmatmul.mubr.msk.bf16.vlgmr.msra.gmra.mrb[44].mxu0 %vm130_vm3, %v1409_v12  ;;  %2841 = vmatmul.mubr.msk.bf16.vlgmr.msra.gmra.mrb[44].mxu1 %vm130_vm3, %v1409_v12 }
 0x48a   :  { %2845 = vmatpush3.bf16.msra.mxu0 %v3645_v24  ;;  %2853 = vmatpush3.bf16.msra.mxu1 %v3648_v25 }
 0x48b   :  { %2846 = vmatprep.subr.bf16.mxu0 %v3327_v0  ;;  %2854 = vmatprep.subr.bf16.mxu1 %v3327_v0 }
 0x48c   :  { %2848 = vmatprep.mubr.msk.bf16.mxu0 %vm3328_vm1, %v3327_v0  ;;  %2856 = vmatprep.mubr.msk.bf16.mxu1 %vm3328_vm1, %v3327_v0 }
 0x48e   :  { %2847 = vmatpush3.bf16.msra.mxu0 %v3657_v26  ;;  %2855 = vmatpush3.bf16.msra.mxu1 %v3660_v27 }
 0x48f   :  { %2860 = vmatprep.subr.bf16.mxu0 %v3327_v0  ;;  %2868 = vmatprep.subr.bf16.mxu1 %v3327_v0 }
 0x554   :  { %v1447_v31 = vpop.f32.mrb[40].mxu0  ;;  %v1495_v33 = vpop.f32.mrb[40].mxu1 }
 0x555   :  { %v1454_v57 = vrot.slane %v1447_v31, 1  ;;  %v1457_v34 = vadd.f32 %v1447_v31, %v1401_v30  ;;  %v1502_v58 = vrot.slane %v1495_v33, 1  ;;  %v1505_v35 = vadd.f32 %v1495_v33, %v1459_v32  ;;  %v2818_v36 = vpop.f32.mrb[41].mxu0  ;;  %v2826_v37 = vpop.f32.mrb[41].mxu1 }
 0x556   :  { %v1450_v40 = vpop.f32.mrb[42].mxu0  ;;  %v1498_v41 = vpop.f32.mrb[42].mxu1 }
 0x557   :  { %v1458_v42 = vadd.f32 %v1454_v57, %v1402_v38  ;;  %v2520_v43 = vmul.f32 -1.442695, %v1457_v34  ;;  %v1506_v44 = vadd.f32 %v1502_v58, %v1460_v39  ;;  %v2522_v45 = vmul.f32 -1.442695, %v1505_v35  ;;  %v2819_v46 = vpop.f32.mrb[43].mxu0  ;;  %v2827_v47 = vpop.f32.mrb[43].mxu1 }
 0x559   :  { %3090 = vpow2.f32 %v2520_v43  ;;  %v2521_v48 = vmul.f32 -1.442695, %v1458_v42  ;;  %v2523_v49 = vmul.f32 -1.442695, %v1506_v44 }
 0x55a   :  { %3092 = vpow2.f32 %v2522_v45 }
 0x55b   :  { %3094 = vpow2.f32 %v2521_v48 }
 0x55c   :  { %3096 = vpow2.f32 %v2523_v49  ;;  %v1543_v50 = vpop.f32.mrb[44].mxu0  ;;  %v1591_v54 = vpop.f32.mrb[44].mxu1 }
 0x55d   :  { %v1550_v56 = vrot.slane %v1543_v50, 1  ;;  %v1598_v59 = vrot.slane %v1591_v54, 1  ;;  %v1601_v28 = vadd.f32 %v1591_v54, %v1555_v51  ;;  %v2834_v60 = vpop.f32.mrb[45].mxu0  ;;  %v2842_v29 = vpop.f32.mrb[45].mxu1  ;;  %v1553_v62 = vadd.f32 %v1543_v50, %v1507_v55  ;;  %v1655_v54 = vld [vmem:[#allocation4 + $0x5] sm:$0x1] }
 0x55e   :  { %v1546_v1 = vpop.f32.mrb[46].mxu0  ;;  %v1594_v2 = vpop.f32.mrb[46].mxu1 }
 0x55f   :  { %v1554_v3 = vadd.f32 %v1550_v56, %v1508_v61  ;;  %v1602_v8 = vadd.f32 %v1598_v59, %v1556_v63  ;;  %v2835_v9 = vpop.f32.mrb[47].mxu0  ;;  %v2843_v14 = vpop.f32.mrb[47].mxu1  ;;  %v2524_v17 = vmul.f32 -1.442695, %v1601_v28  ;;  %3098 = vtanh.f32 %v1553_v62  ;;  %v1713_v56 = vld [vmem:[#allocation4 + $0x15] sm:$0x1] }
 0x560   :  { %v1656_v1 = vld [vmem:[#allocation4 + $0xd] sm:$0x1]  ;;  %v1714_v2 = vld [vmem:[#allocation4 + $0x1d] sm:$0x1] }
 0x561   :  { %v2525_v4 = vmul.f32 -1.442695, %v1602_v8  ;;  %3100 = vtanh.f32 %v1554_v3 }
 0x562   :  { %3102 = vpow2.f32 %v2524_v17 }
 0x563   :  { %v3091_v5 = vpop.eup %3090  ;;  %3104 = vpow2.f32 %v2525_v4 }
 0x564   :  { %v3093_v6 = vpop.eup %3092  ;;  %v1609_v52 = vadd.f32 1.0, %v3091_v5 }
 0x565   :  { %v3095_v7 = vpop.eup %3094  ;;  %v1621_v53 = vadd.f32 1.0, %v3093_v6 }
 0x566   :  { %v3097_v11 = vpop.eup %3096  ;;  %v1610_v13 = vadd.f32 1.0, %v3095_v7  ;;  %3106 = vrcp.f32 %v1609_v52 }
 0x567   :  { %v1622_v18 = vadd.f32 1.0, %v3097_v11  ;;  %3108 = vrcp.f32 %v1621_v53  ;;  %v1809_v11 = vld [vmem:[#allocation4 + $0x35] sm:$0x1] }
 0x568   :  { %3110 = vrcp.f32 %v1610_v13 }
 0x569   :  { %3112 = vrcp.f32 %v1622_v18  ;;  %v3099_v10 = vpop.eup %3098  ;;  %v1761_v18 = vld [vmem:[#allocation4 + $0x25] sm:$0x1] }
 0x56b   :  { %v3101_v19 = vpop.eup %3100 }
 0x56c   :  { %v3103_v12 = vpop.eup %3102 }
 0x56d   :  { %v3105_v30 = vpop.eup %3104  ;;  %v1635_v57 = vadd.f32 1.0, %v3103_v12 }
 0x56e   :  { %v1636_v37 = vadd.f32 1.0, %v3105_v30 }
 0x56f   :  { %3114 = vrcp.f32 %v1635_v57  ;;  %v1810_v57 = vld [vmem:[#allocation4 + $0x3d] sm:$0x1] }
 0x570   :  { %v3107_v31 = vpop.eup %3106 }
 0x571   :  { %v3109_v32 = vpop.eup %3108  ;;  %v1643_v33 = vmul.f32 %v3107_v31, %v3099_v10 }
 0x572   :  { %v3111_v34 = vpop.eup %3110  ;;  %v1641_v58 = vmul.f32 %v3109_v32, %v3612_v15  ;;  %v1762_v32 = vld [vmem:[#allocation4 + $0x2d] sm:$0x1] }
 0x573   :  { %v3113_v35 = vpop.eup %3112  ;;  %v1644_v36 = vmul.f32 %v3111_v34, %v3101_v19 }
 0x574   :  { %v1642_v38 = vmul.f32 %v3113_v35, %v3614_v16  ;;  %v3667_v39 = vadd.f32 %v1643_v33, %v1641_v58 }
 0x576   :  { %v3669_v40 = vadd.f32 %v1644_v36, %v1642_v38  ;;  %3116 = vtanh.f32 %v3667_v39 }
 0x577   :  { %3118 = vrcp.f32 %v1636_v37 }
 0x578   :  { %3120 = vtanh.f32 %v3669_v40 }
 0x579   :  { %v3115_v41 = vpop.eup %3114 }
 0x580   :  { %v3117_v42 = vpop.eup %3116 }
 0x581   :  { %v3119_v43 = vpop.eup %3118  ;;  %v1649_v44 = vmul.f32 %v3117_v42, %v3115_v41 }
 0x582   :  { %v3121_v15 = vpop.eup %3120 }
 0x583   :  { %v1650_v45 = vmul.f32 %v3121_v15, %v3119_v43  ;;  %1651 = vst.msk [vmem:[#allocation5 + $0x4] sm:$0x1] %vm633_vm4, %v1649_v44  ;;  %v1653_v16 = vpack.c.bf16 %v1649_v44, %v1649_v44 }
 0x585   :  { %1652 = vst.msk [vmem:[#allocation5 + $0xc] sm:$0x1] %vm633_vm4, %v1650_v45  ;;  %v1654_v46 = vpack.c.bf16 %v1650_v45, %v1650_v45  ;;  %v1659_v48 = vunpack.c.l.b16 %v1653_v16 }
 0x587   :  { %v1660_v47 = vunpack.c.l.b16 %v1654_v46 }
 0x589   :  { %v1661_v49 = vrot.slane %v1660_v47, 7 }
 0x58b   :  { %v1662_v50 = vsel %vm645_vm5, %v1661_v49, %v1659_v48 }
 0x58c   :  { %v1663_v51 = vpack.c.b16 %v1662_v50, %v1662_v50 }
 0x58e   :  { %2849 = vmatmul.mubr.msk.bf16.vlgmr.msra.gmra.mrb[48].mxu0 %vm130_vm3, %v1663_v51  ;;  %2857 = vmatmul.mubr.msk.bf16.vlgmr.msra.gmra.mrb[48].mxu1 %vm130_vm3, %v1663_v51 }
 0x58f   :  { %2861 = vmatpush3.bf16.msra.mxu0 %v3623_v20  ;;  %2869 = vmatpush3.bf16.msra.mxu1 %v3626_v21 }
 0x590   :  { %2862 = vmatprep.subr.bf16.mxu0 %v3327_v0  ;;  %2870 = vmatprep.subr.bf16.mxu1 %v3327_v0 }
 0x591   :  { %2864 = vmatprep.mubr.msk.bf16.mxu0 %vm3328_vm1, %v3327_v0  ;;  %2872 = vmatprep.mubr.msk.bf16.mxu1 %vm3328_vm1, %v3327_v0 }
 0x593   :  { %2863 = vmatpush3.bf16.msra.mxu0 %v3635_v22  ;;  %2871 = vmatpush3.bf16.msra.mxu1 %v3638_v23 }
 0x594   :  { %2876 = vmatprep.subr.bf16.mxu0 %v3327_v0  ;;  %2884 = vmatprep.subr.bf16.mxu1 %v3327_v0 }
 0x596   :  { %2865 = vmatmul.mubr.msk.bf16.vlgmr.msra.gmra.mrb[52].mxu0 %vm130_vm3, %v1663_v51  ;;  %2873 = vmatmul.mubr.msk.bf16.vlgmr.msra.gmra.mrb[52].mxu1 %vm130_vm3, %v1663_v51 }
 0x597   :  { %2877 = vmatpush3.bf16.msra.mxu0 %v3645_v24  ;;  %2885 = vmatpush3.bf16.msra.mxu1 %v3648_v25 }
 0x598   :  { %2878 = vmatprep.subr.bf16.mxu0 %v3327_v0  ;;  %2886 = vmatprep.subr.bf16.mxu1 %v3327_v0 }
 0x599   :  { %2880 = vmatprep.mubr.msk.bf16.mxu0 %vm3328_vm1, %v3327_v0  ;;  %2888 = vmatprep.mubr.msk.bf16.mxu1 %vm3328_vm1, %v3327_v0 }
 0x59b   :  { %2879 = vmatpush3.bf16.msra.mxu0 %v3657_v26  ;;  %2887 = vmatpush3.bf16.msra.mxu1 %v3660_v27 }
 0x59c   :  { %2892 = vmatprep.subr.bf16.mxu0 %v3327_v0  ;;  %2900 = vmatprep.subr.bf16.mxu1 %v3327_v0 }
 0x661   :  { %v1701_v55 = vpop.f32.mrb[48].mxu0  ;;  %v1749_v59 = vpop.f32.mrb[48].mxu1 }
 0x662   :  { %v1708_v28 = vrot.slane %v1701_v55, 1  ;;  %v1711_v60 = vadd.f32 %v1701_v55, %v1655_v54  ;;  %v1756_v29 = vrot.slane %v1749_v59, 1  ;;  %v1759_v61 = vadd.f32 %v1749_v59, %v1713_v56  ;;  %v2850_v62 = vpop.f32.mrb[49].mxu0  ;;  %v2858_v63 = vpop.f32.mrb[49].mxu1 }
 0x663   :  { %v1704_v3 = vpop.f32.mrb[50].mxu0  ;;  %v1752_v8 = vpop.f32.mrb[50].mxu1 }
 0x664   :  { %v1712_v9 = vadd.f32 %v1708_v28, %v1656_v1  ;;  %v2530_v14 = vmul.f32 -1.442695, %v1711_v60  ;;  %v1760_v17 = vadd.f32 %v1756_v29, %v1714_v2  ;;  %v2532_v4 = vmul.f32 -1.442695, %v1759_v61  ;;  %v2851_v5 = vpop.f32.mrb[51].mxu0  ;;  %v2859_v6 = vpop.f32.mrb[51].mxu1 }
 0x666   :  { %3122 = vpow2.f32 %v2530_v14  ;;  %v2531_v52 = vmul.f32 -1.442695, %v1712_v9  ;;  %v2533_v7 = vmul.f32 -1.442695, %v1760_v17 }
 0x667   :  { %3124 = vpow2.f32 %v2532_v4 }
 0x668   :  { %3126 = vpow2.f32 %v2531_v52 }
 0x669   :  { %3128 = vpow2.f32 %v2533_v7  ;;  %v1797_v53 = vpop.f32.mrb[52].mxu0  ;;  %v1845_v13 = vpop.f32.mrb[52].mxu1 }
 0x66a   :  { %v1804_v10 = vrot.slane %v1797_v53, 1  ;;  %v1852_v19 = vrot.slane %v1845_v13, 1  ;;  %v1855_v12 = vadd.f32 %v1845_v13, %v1809_v11  ;;  %v2866_v30 = vpop.f32.mrb[53].mxu0  ;;  %v2874_v31 = vpop.f32.mrb[53].mxu1  ;;  %v1807_v33 = vadd.f32 %v1797_v53, %v1761_v18  ;;  %v1967_v13 = vld [vmem:[#allocation4 + $0x16] sm:$0x1] }
 0x66b   :  { %v1800_v34 = vpop.f32.mrb[54].mxu0  ;;  %v1848_v58 = vpop.f32.mrb[54].mxu1 }
 0x66c   :  { %v1808_v35 = vadd.f32 %v1804_v10, %v1762_v32  ;;  %v1856_v36 = vadd.f32 %v1852_v19, %v1810_v57  ;;  %v2867_v37 = vpop.f32.mrb[55].mxu0  ;;  %v2875_v38 = vpop.f32.mrb[55].mxu1  ;;  %v2534_v41 = vmul.f32 -1.442695, %v1855_v12  ;;  %3130 = vtanh.f32 %v1807_v33  ;;  %v1910_v33 = vld [vmem:[#allocation4 + $0xe] sm:$0x1] }
 0x66d   :  { %v1968_v57 = vld [vmem:[#allocation4 + $0x1e] sm:$0x1] }
 0x66e   :  { %v2535_v42 = vmul.f32 -1.442695, %v1856_v36  ;;  %3132 = vtanh.f32 %v1808_v35 }
 0x66f   :  { %3134 = vpow2.f32 %v2534_v41 }
 0x670   :  { %v3123_v43 = vpop.eup %3122  ;;  %3136 = vpow2.f32 %v2535_v42 }
 0x671   :  { %v3125_v44 = vpop.eup %3124  ;;  %v1863_v15 = vadd.f32 1.0, %v3123_v43 }
 0x672   :  { %v3127_v45 = vpop.eup %3126  ;;  %v1875_v16 = vadd.f32 1.0, %v3125_v44  ;;  %v2063_v44 = vld [vmem:[#allocation4 + $0x36] sm:$0x1] }
 0x673   :  { %v3129_v46 = vpop.eup %3128  ;;  %v1864_v47 = vadd.f32 1.0, %v3127_v45  ;;  %3138 = vrcp.f32 %v1863_v15  ;;  %v2015_v45 = vld [vmem:[#allocation4 + $0x26] sm:$0x1] }
 0x674   :  { %v1876_v48 = vadd.f32 1.0, %v3129_v46  ;;  %3140 = vrcp.f32 %v1875_v16 }
 0x675   :  { %3142 = vrcp.f32 %v1864_v47 }
 0x676   :  { %3144 = vrcp.f32 %v1876_v48  ;;  %v3131_v49 = vpop.eup %3130 }
 0x678   :  { %v3133_v50 = vpop.eup %3132 }
 0x679   :  { %v3135_v51 = vpop.eup %3134 }
 0x67a   :  { %v3137_v54 = vpop.eup %3136  ;;  %v1889_v28 = vadd.f32 1.0, %v3135_v51 }
 0x67b   :  { %v1890_v63 = vadd.f32 1.0, %v3137_v54  ;;  %v2064_v54 = vld [vmem:[#allocation4 + $0x3e] sm:$0x1] }
 0x67c   :  { %3146 = vrcp.f32 %v1889_v28 }
 0x67d   :  { %v3139_v55 = vpop.eup %3138 }
 0x67e   :  { %v3141_v56 = vpop.eup %3140  ;;  %v1897_v59 = vmul.f32 %v3139_v55, %v3131_v49 }
 0x67f   :  { %v3143_v60 = vpop.eup %3142  ;;  %v1895_v29 = vmul.f32 %v3141_v56, %v3667_v39 }
 0x680   :  { %v3145_v61 = vpop.eup %3144  ;;  %v1898_v62 = vmul.f32 %v3143_v60, %v3133_v50  ;;  %v2016_v50 = vld [vmem:[#allocation4 + $0x2e] sm:$0x1] }
 0x681   :  { %v1896_v1 = vmul.f32 %v3145_v61, %v3669_v40  ;;  %v3706_v2 = vadd.f32 %v1897_v59, %v1895_v29 }
 0x683   :  { %v3708_v3 = vadd.f32 %v1898_v62, %v1896_v1  ;;  %3148 = vtanh.f32 %v3706_v2 }
 0x684   :  { %3150 = vrcp.f32 %v1890_v63 }
 0x685   :  { %3152 = vtanh.f32 %v3708_v3 }
 0x686   :  { %v3147_v8 = vpop.eup %3146 }
 0x68d   :  { %v3149_v9 = vpop.eup %3148 }
 0x68e   :  { %v3151_v14 = vpop.eup %3150  ;;  %v1903_v17 = vmul.f32 %v3149_v9, %v3147_v8 }
 0x68f   :  { %v3153_v39 = vpop.eup %3152 }
 0x690   :  { %v1904_v4 = vmul.f32 %v3153_v39, %v3151_v14  ;;  %1905 = vst.msk [vmem:[#allocation5 + $0x5] sm:$0x1] %vm633_vm4, %v1903_v17  ;;  %v1907_v40 = vpack.c.bf16 %v1903_v17, %v1903_v17 }
 0x692   :  { %1906 = vst.msk [vmem:[#allocation5 + $0xd] sm:$0x1] %vm633_vm4, %v1904_v4  ;;  %v1908_v5 = vpack.c.bf16 %v1904_v4, %v1904_v4  ;;  %v1913_v52 = vunpack.c.l.b16 %v1907_v40 }
 0x694   :  { %v1914_v6 = vunpack.c.l.b16 %v1908_v5 }
 0x696   :  { %v1915_v7 = vrot.slane %v1914_v6, 7 }
 0x698   :  { %v1916_v53 = vsel %vm645_vm5, %v1915_v7, %v1913_v52 }
 0x699   :  { %v1917_v11 = vpack.c.b16 %v1916_v53, %v1916_v53 }
 0x69b   :  { %2881 = vmatmul.mubr.msk.bf16.vlgmr.msra.gmra.mrb[56].mxu0 %vm130_vm3, %v1917_v11  ;;  %2889 = vmatmul.mubr.msk.bf16.vlgmr.msra.gmra.mrb[56].mxu1 %vm130_vm3, %v1917_v11 }
 0x69c   :  { %2893 = vmatpush3.bf16.msra.mxu0 %v3623_v20  ;;  %2901 = vmatpush3.bf16.msra.mxu1 %v3626_v21 }
 0x69d   :  { %2894 = vmatprep.subr.bf16.mxu0 %v3327_v0  ;;  %2902 = vmatprep.subr.bf16.mxu1 %v3327_v0 }
 0x69e   :  { %2896 = vmatprep.mubr.msk.bf16.mxu0 %vm3328_vm1, %v3327_v0  ;;  %2904 = vmatprep.mubr.msk.bf16.mxu1 %vm3328_vm1, %v3327_v0 }
 0x6a0   :  { %2895 = vmatpush3.bf16.msra.mxu0 %v3635_v22  ;;  %2903 = vmatpush3.bf16.msra.mxu1 %v3638_v23 }
 0x6a1   :  { %2908 = vmatprep.subr.bf16.mxu0 %v3327_v0  ;;  %2916 = vmatprep.subr.bf16.mxu1 %v3327_v0 }
 0x6a3   :  { %2897 = vmatmul.mubr.msk.bf16.vlgmr.msra.gmra.mrb[60].mxu0 %vm130_vm3, %v1917_v11  ;;  %2905 = vmatmul.mubr.msk.bf16.vlgmr.msra.gmra.mrb[60].mxu1 %vm130_vm3, %v1917_v11 }
 0x6a4   :  { %2909 = vmatpush3.bf16.msra.mxu0 %v3645_v24  ;;  %2917 = vmatpush3.bf16.msra.mxu1 %v3648_v25  ;;  %v1909_v24 = vld [vmem:[#allocation4 + $0x6] sm:$0x1] }
 0x6a5   :  { %2910 = vmatprep.subr.bf16.mxu0 %v3327_v0  ;;  %2918 = vmatprep.subr.bf16.mxu1 %v3327_v0 }
 0x6a6   :  { %2912 = vmatprep.mubr.msk.bf16.mxu0 %vm3328_vm1, %v3327_v0  ;;  %2920 = vmatprep.mubr.msk.bf16.mxu1 %vm3328_vm1, %v3327_v0 }
 0x6a8   :  { %2911 = vmatpush3.bf16.msra.mxu0 %v3657_v26  ;;  %2919 = vmatpush3.bf16.msra.mxu1 %v3660_v27 }
 0x6a9   :  { %2924 = vmatprep.subr.bf16.mxu0 %v3327_v0  ;;  %2932 = vmatprep.subr.bf16.mxu1 %v3327_v0 }
 0x76e   :  { %v1955_v25 = vpop.f32.mrb[56].mxu0  ;;  %v2003_v18 = vpop.f32.mrb[56].mxu1 }
 0x76f   :  { %v1962_v10 = vrot.slane %v1955_v25, 1  ;;  %v1965_v19 = vadd.f32 %v1955_v25, %v1909_v24  ;;  %v2010_v12 = vrot.slane %v2003_v18, 1  ;;  %v2013_v30 = vadd.f32 %v2003_v18, %v1967_v13  ;;  %v2882_v31 = vpop.f32.mrb[57].mxu0  ;;  %v2890_v32 = vpop.f32.mrb[57].mxu1 }
 0x770   :  { %v1958_v34 = vpop.f32.mrb[58].mxu0  ;;  %v2006_v26 = vpop.f32.mrb[58].mxu1 }
 0x771   :  { %v1966_v58 = vadd.f32 %v1962_v10, %v1910_v33  ;;  %v2540_v27 = vmul.f32 -1.442695, %v1965_v19  ;;  %v2014_v35 = vadd.f32 %v2010_v12, %v1968_v57  ;;  %v2542_v36 = vmul.f32 -1.442695, %v2013_v30  ;;  %v2883_v37 = vpop.f32.mrb[59].mxu0  ;;  %v2891_v38 = vpop.f32.mrb[59].mxu1 }
 0x773   :  { %3154 = vpow2.f32 %v2540_v27  ;;  %v2541_v41 = vmul.f32 -1.442695, %v1966_v58  ;;  %v2543_v42 = vmul.f32 -1.442695, %v2014_v35 }
 0x774   :  { %3156 = vpow2.f32 %v2542_v36 }
 0x775   :  { %3158 = vpow2.f32 %v2541_v41  ;;  %v2221_v41 = vld [vmem:[#allocation4 + $0x17] sm:$0x1] }
 0x776   :  { %3160 = vpow2.f32 %v2543_v42  ;;  %v2051_v43 = vpop.f32.mrb[60].mxu0  ;;  %v2099_v15 = vpop.f32.mrb[60].mxu1 }
 0x777   :  { %v2058_v16 = vrot.slane %v2051_v43, 1  ;;  %v2106_v46 = vrot.slane %v2099_v15, 1  ;;  %v2109_v47 = vadd.f32 %v2099_v15, %v2063_v44  ;;  %v2898_v48 = vpop.f32.mrb[61].mxu0  ;;  %v2906_v49 = vpop.f32.mrb[61].mxu1  ;;  %v2061_v51 = vadd.f32 %v2051_v43, %v2015_v45 }
 0x778   :  { %v2054_v55 = vpop.f32.mrb[62].mxu0  ;;  %v2102_v56 = vpop.f32.mrb[62].mxu1 }
 0x779   :  { %v2062_v59 = vadd.f32 %v2058_v16, %v2016_v50  ;;  %v2110_v28 = vadd.f32 %v2106_v46, %v2064_v54  ;;  %v2899_v60 = vpop.f32.mrb[63].mxu0  ;;  %v2907_v29 = vpop.f32.mrb[63].mxu1  ;;  %v2544_v61 = vmul.f32 -1.442695, %v2109_v47  ;;  %3162 = vtanh.f32 %v2061_v51  ;;  %v2164_v47 = vld [vmem:[#allocation4 + $0xf] sm:$0x1] }
 0x77a   :  { %v2317_v60 = vld [vmem:[#allocation4 + $0x37] sm:$0x1] }
 0x77b   :  { %v2545_v62 = vmul.f32 -1.442695, %v2110_v28  ;;  %3164 = vtanh.f32 %v2062_v59 }
 0x77c   :  { %3166 = vpow2.f32 %v2544_v61  ;;  %v2269_v61 = vld [vmem:[#allocation4 + $0x27] sm:$0x1] }
 0x77d   :  { %v3155_v63 = vpop.eup %3154  ;;  %3168 = vpow2.f32 %v2545_v62 }
 0x77e   :  { %v3157_v1 = vpop.eup %3156  ;;  %v2117_v8 = vadd.f32 1.0, %v3155_v63 }
 0x77f   :  { %v3159_v9 = vpop.eup %3158  ;;  %v2129_v14 = vadd.f32 1.0, %v3157_v1 }
 0x780   :  { %v3161_v17 = vpop.eup %3160  ;;  %v2118_v39 = vadd.f32 1.0, %v3159_v9  ;;  %3170 = vrcp.f32 %v2117_v8 }
 0x781   :  { %v2130_v4 = vadd.f32 1.0, %v3161_v17  ;;  %3172 = vrcp.f32 %v2129_v14  ;;  %v2270_v14 = vld [vmem:[#allocation4 + $0x2f] sm:$0x1] }
 0x782   :  { %3174 = vrcp.f32 %v2118_v39  ;;  %v2318_v39 = vld [vmem:[#allocation4 + $0x3f] sm:$0x1] }
 0x783   :  { %3176 = vrcp.f32 %v2130_v4  ;;  %v3163_v40 = vpop.eup %3162 }
 0x785   :  { %v3165_v5 = vpop.eup %3164 }
 0x786   :  { %v3167_v6 = vpop.eup %3166 }
 0x787   :  { %v3169_v52 = vpop.eup %3168  ;;  %v2143_v24 = vadd.f32 1.0, %v3167_v6 }
 0x788   :  { %v2144_v19 = vadd.f32 1.0, %v3169_v52 }
 0x789   :  { %3178 = vrcp.f32 %v2143_v24 }
 0x78a   :  { %v3171_v7 = vpop.eup %3170 }
 0x78b   :  { %v3173_v53 = vpop.eup %3172  ;;  %v2151_v11 = vmul.f32 %v3171_v7, %v3163_v40 }
 0x78c   :  { %v3175_v25 = vpop.eup %3174  ;;  %v2149_v13 = vmul.f32 %v3173_v53, %v3706_v2 }
 0x78d   :  { %v3177_v18 = vpop.eup %3176  ;;  %v2152_v10 = vmul.f32 %v3175_v25, %v3165_v5 }
 0x78e   :  { %v2150_v12 = vmul.f32 %v3177_v18, %v3708_v3  ;;  %v3745_v30 = vadd.f32 %v2151_v11, %v2149_v13 }
 0x790   :  { %v3747_v31 = vadd.f32 %v2152_v10, %v2150_v12  ;;  %3180 = vtanh.f32 %v3745_v30 }
 0x791   :  { %3182 = vrcp.f32 %v2144_v19 }
 0x792   :  { %3184 = vtanh.f32 %v3747_v31 }
 0x793   :  { %v3179_v32 = vpop.eup %3178 }
 0x79a   :  { %v3181_v33 = vpop.eup %3180 }
 0x79b   :  { %v3183_v57 = vpop.eup %3182  ;;  %v2157_v34 = vmul.f32 %v3181_v33, %v3179_v32 }
 0x79c   :  { %v3185_v2 = vpop.eup %3184 }
 0x79d   :  { %v2158_v26 = vmul.f32 %v3185_v2, %v3183_v57  ;;  %2159 = vst.msk [vmem:[#allocation5 + $0x6] sm:$0x1] %vm633_vm4, %v2157_v34  ;;  %v2161_v3 = vpack.c.bf16 %v2157_v34, %v2157_v34 }
 0x79f   :  { %2160 = vst.msk [vmem:[#allocation5 + $0xe] sm:$0x1] %vm633_vm4, %v2158_v26  ;;  %v2162_v58 = vpack.c.bf16 %v2158_v26, %v2158_v26  ;;  %v2167_v35 = vunpack.c.l.b16 %v2161_v3 }
 0x7a1   :  { %v2168_v27 = vunpack.c.l.b16 %v2162_v58 }
 0x7a3   :  { %v2169_v36 = vrot.slane %v2168_v27, 7 }
 0x7a5   :  { %v2170_v37 = vsel %vm645_vm5, %v2169_v36, %v2167_v35 }
 0x7a6   :  { %v2171_v38 = vpack.c.b16 %v2170_v37, %v2170_v37 }
 0x7a8   :  { %2913 = vmatmul.mubr.msk.bf16.vlgmr.msra.gmra.mrb[64].mxu0 %vm130_vm3, %v2171_v38  ;;  %2921 = vmatmul.mubr.msk.bf16.vlgmr.msra.gmra.mrb[64].mxu1 %vm130_vm3, %v2171_v38 }
 0x7a9   :  { %2925 = vmatpush3.bf16.msra.mxu0 %v3623_v20  ;;  %2933 = vmatpush3.bf16.msra.mxu1 %v3626_v21  ;;  %v2163_v20 = vld [vmem:[#allocation4 + $0x7] sm:$0x1] }
 0x7aa   :  { %2926 = vmatprep.subr.bf16.mxu0 %v3327_v0  ;;  %2934 = vmatprep.subr.bf16.mxu1 %v3327_v0 }
 0x7ab   :  { %2928 = vmatprep.mubr.msk.bf16.mxu0 %vm3328_vm1, %v3327_v0  ;;  %2936 = vmatprep.mubr.msk.bf16.mxu1 %vm3328_vm1, %v3327_v0  ;;  %v2222_v0 = vld [vmem:[#allocation4 + $0x1f] sm:$0x1] }
 0x7ad   :  { %2927 = vmatpush3.bf16.msra.mxu0 %v3635_v22  ;;  %2935 = vmatpush3.bf16.msra.mxu1 %v3638_v23 }
 0x7b0   :  { %2929 = vmatmul.mubr.msk.bf16.vlgmr.msra.gmra.mrb[68].mxu0 %vm130_vm3, %v2171_v38  ;;  %2937 = vmatmul.mubr.msk.bf16.vlgmr.msra.gmra.mrb[68].mxu1 %vm130_vm3, %v2171_v38 }
 0x87b   :  { %v2209_v21 = vpop.f32.mrb[64].mxu0  ;;  %v2257_v42 = vpop.f32.mrb[64].mxu1 }
 0x87c   :  { %v2216_v43 = vrot.slane %v2209_v21, 1  ;;  %v2219_v44 = vadd.f32 %v2209_v21, %v2163_v20  ;;  %v2264_v15 = vrot.slane %v2257_v42, 1  ;;  %v2267_v45 = vadd.f32 %v2257_v42, %v2221_v41  ;;  %v2914_v16 = vpop.f32.mrb[65].mxu0  ;;  %v2922_v46 = vpop.f32.mrb[65].mxu1 }
 0x87d   :  { %v2212_v48 = vpop.f32.mrb[66].mxu0  ;;  %v2260_v22 = vpop.f32.mrb[66].mxu1 }
 0x87e   :  { %v2220_v49 = vadd.f32 %v2216_v43, %v2164_v47  ;;  %v2550_v23 = vmul.f32 -1.442695, %v2219_v44  ;;  %v2268_v50 = vadd.f32 %v2264_v15, %v2222_v0  ;;  %v2552_v51 = vmul.f32 -1.442695, %v2267_v45  ;;  %v2915_v54 = vpop.f32.mrb[67].mxu0  ;;  %v2923_v55 = vpop.f32.mrb[67].mxu1 }
 0x880   :  { %3186 = vpow2.f32 %v2550_v23  ;;  %v2551_v56 = vmul.f32 -1.442695, %v2220_v49  ;;  %v2553_v59 = vmul.f32 -1.442695, %v2268_v50 }
 0x881   :  { %3188 = vpow2.f32 %v2552_v51 }
 0x882   :  { %3190 = vpow2.f32 %v2551_v56 }
 0x883   :  { %3192 = vpow2.f32 %v2553_v59  ;;  %v2305_v28 = vpop.f32.mrb[68].mxu0  ;;  %v2353_v29 = vpop.f32.mrb[68].mxu1 }
 0x884   :  { %v2312_v62 = vrot.slane %v2305_v28, 1  ;;  %v2360_v63 = vrot.slane %v2353_v29, 1  ;;  %v2363_v1 = vadd.f32 %v2353_v29, %v2317_v60  ;;  %v2930_v8 = vpop.f32.mrb[69].mxu0  ;;  %v2938_v9 = vpop.f32.mrb[69].mxu1  ;;  %v2315_v17 = vadd.f32 %v2305_v28, %v2269_v61 }
 0x885   :  { %v2308_v4 = vpop.f32.mrb[70].mxu0  ;;  %v2356_v40 = vpop.f32.mrb[70].mxu1 }
 0x886   :  { %v2316_v5 = vadd.f32 %v2312_v62, %v2270_v14  ;;  %v2364_v6 = vadd.f32 %v2360_v63, %v2318_v39  ;;  %v2931_v52 = vpop.f32.mrb[71].mxu0  ;;  %v2939_v7 = vpop.f32.mrb[71].mxu1  ;;  %v2554_v53 = vmul.f32 -1.442695, %v2363_v1  ;;  %3194 = vtanh.f32 %v2315_v17 }
 0x888   :  { %v2555_v11 = vmul.f32 -1.442695, %v2364_v6  ;;  %3196 = vtanh.f32 %v2316_v5 }
 0x889   :  { %3198 = vpow2.f32 %v2554_v53 }
 0x88a   :  { %v3187_v24 = vpop.eup %3186  ;;  %3200 = vpow2.f32 %v2555_v11 }
 0x88b   :  { %v3189_v25 = vpop.eup %3188  ;;  %v2371_v13 = vadd.f32 1.0, %v3187_v24 }
 0x88c   :  { %v3191_v18 = vpop.eup %3190  ;;  %v2383_v10 = vadd.f32 1.0, %v3189_v25 }
 0x88d   :  { %v3193_v19 = vpop.eup %3192  ;;  %v2372_v12 = vadd.f32 1.0, %v3191_v18  ;;  %3202 = vrcp.f32 %v2371_v13 }
 0x88e   :  { %v2384_v32 = vadd.f32 1.0, %v3193_v19  ;;  %3204 = vrcp.f32 %v2383_v10 }
 0x88f   :  { %3206 = vrcp.f32 %v2372_v12 }
 0x890   :  { %3208 = vrcp.f32 %v2384_v32  ;;  %v3195_v33 = vpop.eup %3194 }
 0x892   :  { %v3197_v57 = vpop.eup %3196 }
 0x893   :  { %v3199_v34 = vpop.eup %3198 }
 0x894   :  { %v3201_v2 = vpop.eup %3200  ;;  %v2397_v27 = vadd.f32 1.0, %v3199_v34 }
 0x895   :  { %v2398_v20 = vadd.f32 1.0, %v3201_v2 }
 0x896   :  { %3210 = vrcp.f32 %v2397_v27 }
 0x897   :  { %v3203_v26 = vpop.eup %3202 }
 0x898   :  { %v3205_v3 = vpop.eup %3204  ;;  %v2405_v58 = vmul.f32 %v3203_v26, %v3195_v33 }
 0x899   :  { %v3207_v35 = vpop.eup %3206  ;;  %v2403_v36 = vmul.f32 %v3205_v3, %v3745_v30 }
 0x89a   :  { %v3209_v37 = vpop.eup %3208  ;;  %v2406_v38 = vmul.f32 %v3207_v35, %v3197_v57 }
 0x89b   :  { %v2404_v21 = vmul.f32 %v3209_v37, %v3747_v31  ;;  %v2407_v41 = vadd.f32 %v2405_v58, %v2403_v36 }
 0x89d   :  { %v2408_v42 = vadd.f32 %v2406_v38, %v2404_v21  ;;  %3212 = vtanh.f32 %v2407_v41 }
 0x89e   :  { %3214 = vrcp.f32 %v2398_v20 }
 0x89f   :  { %3216 = vtanh.f32 %v2408_v42  ;;  %v2424_v43 = vrot.slane %v2408_v42, 7 }
 0x8a0   :  { %v3211_v15 = vpop.eup %3210 }
 0x8a1   :  { %v2425_v44 = vsel %vm645_vm5, %v2424_v43, %v2407_v41 }
 0x8a2   :  { %2427 = vst.msk [vmem:[#allocation3] sm:$0x3] %vm64_vm0, %v2425_v44 }
 0x8a7   :  { %v3213_v45 = vpop.eup %3212 }
 0x8a8   :  { %v3215_v16 = vpop.eup %3214  ;;  %v2411_v30 = vmul.f32 %v3213_v45, %v3211_v15 }
 0x8a9   :  { %v3217_v46 = vpop.eup %3216 }
 0x8aa   :  { %v2412_v47 = vmul.f32 %v3217_v46, %v3215_v16  ;;  %2413 = vst.msk [vmem:[#allocation5 + $0x7] sm:$0x1] %vm633_vm4, %v2411_v30 }
 0x8ac   :  { %2414 = vst.msk [vmem:[#allocation5 + $0xf] sm:$0x1] %vm633_vm4, %v2412_v47  ;;  %v2417_v31 = vrot.slane %v2412_v47, 7 }
 0x8ae   :  { %v2418_v0 = vsel %vm645_vm5, %v2417_v31, %v2411_v30 }
 0x8af   :  { %2421 = vst.msk [vmem:[#allocation2] sm:$0x3] %vm64_vm0, %v2418_v0 }
 0x8b1   :  { %v2428_v48 = vld [vmem:[#allocation5] sm:$0xff] }
 0x8b2   :  { %v2430_v22 = vpack.c.bf16 %v2428_v48, %v2428_v48 }
 0x8b3   :  { %v2429_v49 = vld [vmem:[#allocation5 + $0x8] sm:$0xff] }
 0x8b4   :  { %v2431_v23 = vpack.c.bf16 %v2429_v49, %v2429_v49  ;;  %2433 = vst.msk [vmem:[#allocation12] sm:$0xf] %vm2432_vm6, %v2430_v22 }
 0x8b6   :  { %2434 = vst.msk [vmem:[#allocation12 + $0x4] sm:$0xf] %vm2432_vm6, %v2431_v23 }
 0x8b7   :  { %3303 = shalt.err (!%p3300_p0)
}
 0x8b8   :  { %s3304_s13 = scalar_lea.hbm %s3795_s4, 128 }
 0x8b9   :  { %p3305_p1 = scmp.ne.s32.totalorder %s3795_s4, %s3304_s13  ;;  %p3308_p2 = scmp.lt.u32.totalorder %s3304_s13, %s3795_s4 }
 0x8bb   :  { %p3310_p3 = pnand %p3308_p2, %p3305_p1 }
 0x8bd   :  { %3313 = shalt.err (!%p3310_p3)
}
 0x8be   :  { %2446 = dma.vmem_to_hbm [thread:$0]  %s2441_s10, 128, %s3795_s4, [#allocation8], %s3321_s25, %s3321_s25, %s3322_s26  }
 0x8bf   :  { %3318 = dma.done.wait [#allocation8], 128  }
 0x8c0   :  { %3319 = vsyncadd [#allocation8], 4294967168 }
 0x8c1   :  { %2450 = vsyncpa [#allocation7], 1 }
 0x8c2   :  { %2451 = vsyncpa [#allocation10], 1 }
 0x8c3   :  { %2452 = vsyncpa [#allocation8], 1 }

</bundles_post_ra>
